<compile_context>
chip_gen: v6e
topology: v6e:2x2x1
jax: 0.10.0
libtpu: 0.0.40
codegen_flags: <defaults>
</compile_context>

<pallas_src>
import functools

import numpy as np

import jax
import jax.numpy as jnp
from jax.experimental import pallas as pl
from jax.experimental.pallas import tpu as pltpu


def _round_up(x, m):
    return (x + m - 1) // m * m


# ------------------------------ Pallas kernel -------------------------------

def _lenet_kernel(x_ref, t1_ref, b1_ref, sh1_ref, sw1_ref,
                  t2_ref, b2_ref, sh2_ref, sw2_ref,
                  w3_ref, b3_ref, f1w_ref, f1b_ref, f2w_ref, f2b_ref,
                  o_ref, *, batch_tile):
    f32 = jnp.float32

    for t in range(batch_tile):                      # static unroll over the tile
        x = x_ref[t]                                 # (32, 32) zero-padded image

        # ---- conv1 (5x5, pad=2) as 5 banded-Toeplitz MXU matmuls ----------
        # a1[i, c*28 + j] = sum_{di,dj} x[i+di, j+dj] * w1[di,dj,0,c]
        a1 = jnp.dot(x[0:28, :], t1_ref[0], preferred_element_type=f32)
        for di in range(1, 5):
            a1 = a1 + jnp.dot(x[di:di + 28, :], t1_ref[di],
                              preferred_element_type=f32)
        # 2x2/2 max-pool via pairwise max (lanes, then sublanes); bias + ReLU
        # hoisted after the pool max (+b commutes with max, ReLU is monotone).
        m = jnp.maximum(a1[:, :167], a1[:, 1:168])
        m = jnp.maximum(m[:27, :], m[1:28, :])
        p1 = jnp.maximum(m + b1_ref[...], 0.0)                        # (27, 167)
        # exact 0/1 selection matmuls pick the stride-2 rows / columns.
        pooled1 = jnp.dot(sh1_ref[...],
                          jnp.dot(p1, sw1_ref[...], preferred_element_type=f32),
                          preferred_element_type=f32)                 # (14, 6*14)

        # ---- conv2 (5x5, valid) + ReLU + pool, same structure --------------
        a2 = jnp.dot(pooled1[0:10, :], t2_ref[0], preferred_element_type=f32)
        for di in range(1, 5):
            a2 = a2 + jnp.dot(pooled1[di:di + 10, :], t2_ref[di],
                              preferred_element_type=f32)
        m = jnp.maximum(a2[:, :159], a2[:, 1:160])
        m = jnp.maximum(m[:9, :], m[1:10, :])
        p2 = jnp.maximum(m + b2_ref[...], 0.0)                        # (9, 159)
        pooled2 = jnp.dot(sh2_ref[...],
                          jnp.dot(p2, sw2_ref[...], preferred_element_type=f32),
                          preferred_element_type=f32)                 # (5, 16*5)

        # ---- conv3: 5x5 valid on the 5x5 map == full contraction -----------
        h = jnp.dot(pooled2[0:1, :], w3_ref[0], preferred_element_type=f32)
        for p in range(1, 5):
            h = h + jnp.dot(pooled2[p:p + 1, :], w3_ref[p],
                            preferred_element_type=f32)
        h = jnp.maximum(h + b3_ref[...], 0.0)                         # (1, 120)

        # ---- fc1 -> ReLU -> fc2 -> softmax ---------------------------------
        h = jnp.maximum(jnp.dot(h, f1w_ref[...], preferred_element_type=f32)
                        + f1b_ref[...], 0.0)                          # (1, 84)
        logits = (jnp.dot(h, f2w_ref[...], preferred_element_type=f32)
                  + f2b_ref[...])                                     # (1, 10)

        z = logits - jnp.max(logits, axis=-1, keepdims=True)
        e = jnp.exp(z)
        o_ref[t] = e / jnp.sum(e, axis=-1, keepdims=True)


# ---------------------- host-side one-time weight prep ----------------------

def prepare_params(params):
    """Re-layout LeNet weights into the banded / selection matrices the fused
    kernel consumes.  Done once, outside the per-call forward path."""
    f32 = jnp.float32
    w1 = jnp.asarray(params["conv1_w"], f32)[:, :, 0, :]   # (5,5,6)   (di,dj,c)
    w2 = jnp.asarray(params["conv2_w"], f32)                # (5,5,6,16)
    w3 = jnp.asarray(params["conv3_w"], f32)                # (5,5,16,120)

    # conv1 banded matrices: t1[di, jin, c*28 + j] = w1[di, jin-j, c]
    jin = np.arange(32)[:, None]
    j = np.arange(28)[None, :]
    dj = jin - j
    valid = ((dj >= 0) & (dj < 5)).astype(np.float32)
    g = w1[:, np.clip(dj, 0, 4), :] * valid[None, :, :, None]       # (5,32,28,6)
    t1 = jnp.transpose(g, (0, 1, 3, 2)).reshape(5, 32, 6 * 28)

    # conv2 banded matrices: t2[di, c*14 + jin, o*10 + j] = w2[di, jin-j, c, o]
    jin = np.arange(14)[:, None]
    j = np.arange(10)[None, :]
    dj = jin - j
    valid = ((dj >= 0) & (dj < 5)).astype(np.float32)
    g = w2[:, np.clip(dj, 0, 4), :, :] * valid[None, :, :, None, None]  # (5,14,10,6,16)
    t2 = jnp.transpose(g, (0, 3, 1, 4, 2)).reshape(5, 6 * 14, 16 * 10)

    def sel_rows(n_out):                       # (n_out, 2*n_out-1): pick even rows
        r = np.arange(2 * n_out - 1)[None, :]
        p = np.arange(n_out)[:, None]
        return jnp.asarray((r == 2 * p).astype(np.float32))

    def sel_cols(n_ch, w_in, w_out):           # pick even cols inside each channel block
        rows = np.arange(n_ch * w_in - 1)
        cols = np.arange(n_ch * w_out)
        rc, rj = rows // w_in, rows % w_in
        cc, cj = cols // w_out, cols % w_out
        m = (rc[:, None] == cc[None, :]) & (rj[:, None] == 2 * cj[None, :])
        return jnp.asarray(m.astype(np.float32))

    return {
        "t1": t1,                                                        # (5, 32, 168)
        "b1": jnp.repeat(jnp.asarray(params["conv1_b"], f32), 28)[None, :167],
        "sh1": sel_rows(14),                                             # (14, 27)
        "sw1": sel_cols(6, 28, 14),                                      # (167, 84)
        "t2": t2,                                                        # (5, 84, 160)
        "b2": jnp.repeat(jnp.asarray(params["conv2_b"], f32), 10)[None, :159],
        "sh2": sel_rows(5),                                              # (5, 9)
        "sw2": sel_cols(16, 10, 5),                                      # (159, 80)
        "w3": jnp.transpose(w3, (0, 2, 1, 3)).reshape(5, 80, 120),       # (5, 80, 120)
        "b3": jnp.asarray(params["conv3_b"], f32)[None, :],
        "fc1_w": jnp.asarray(params["fc1_w"], f32),
        "fc1_b": jnp.asarray(params["fc1_b"], f32)[None, :],
        "fc2_w": jnp.asarray(params["fc2_w"], f32),
        "fc2_b": jnp.asarray(params["fc2_b"], f32)[None, :],
    }


# ------------------------------ fused forward --------------------------------

def lenet_forward(prepped, x_nchw, *, batch_tile=None):
    x = jnp.asarray(x_nchw, jnp.float32)[:, 0]            # (N, 28, 28), Cin = 1
    n = x.shape[0]
    x = jnp.pad(x, ((0, 0), (2, 2), (2, 2)))              # conv1 padding=2 -> (N,32,32)

    if batch_tile is None:
        # >= 2 grid steps whenever N >= 2 so the parallel axis can shard over
        # v7x's two TensorCores; raise for large batches to amortize step cost.
        batch_tile = max(1, min(8, n // 2))
    tb = batch_tile
    n_pad = _round_up(n, tb)
    if n_pad != n:
        x = jnp.pad(x, ((0, n_pad - n), (0, 0), (0, 0)))

    w = prepped
    const2 = lambda i: (0, 0)
    const3 = lambda i: (0, 0, 0)

    out = pl.pallas_call(
        functools.partial(_lenet_kernel, batch_tile=tb),
        out_shape=jax.ShapeDtypeStruct((n_pad, 1, 10), jnp.float32),
        grid=(n_pad // tb,),
        in_specs=[
            pl.BlockSpec((tb, 32, 32), lambda i: (i, 0, 0)),   # streamed images
            pl.BlockSpec(w["t1"].shape, const3),               # resident weights ...
            pl.BlockSpec(w["b1"].shape, const2),
            pl.BlockSpec(w["sh1"].shape, const2),
            pl.BlockSpec(w["sw1"].shape, const2),
            pl.BlockSpec(w["t2"].shape, const3),
            pl.BlockSpec(w["b2"].shape, const2),
            pl.BlockSpec(w["sh2"].shape, const2),
            pl.BlockSpec(w["sw2"].shape, const2),
            pl.BlockSpec(w["w3"].shape, const3),
            pl.BlockSpec(w["b3"].shape, const2),
            pl.BlockSpec(w["fc1_w"].shape, const2),
            pl.BlockSpec(w["fc1_b"].shape, const2),
            pl.BlockSpec(w["fc2_w"].shape, const2),
            pl.BlockSpec(w["fc2_b"].shape, const2),
        ],
        out_specs=pl.BlockSpec((tb, 1, 10), lambda i: (i, 0, 0)),
        compiler_params=pltpu.CompilerParams(
            dimension_semantics=("parallel",),
            vmem_limit_bytes=32 * 1024 * 1024,
        ),
    )(x, w["t1"], w["b1"], w["sh1"], w["sw1"], w["t2"], w["b2"], w["sh2"],
      w["sw2"], w["w3"], w["b3"], w["fc1_w"], w["fc1_b"], w["fc2_w"], w["fc2_b"])

    return out[:n, 0, :]


# ------------------------------ LeNet params ---------------------------------

def init_params(key):
    ks = jax.random.split(key, 10)

    def u(k, shape, fan_in):
        bound = 1.0 / jnp.sqrt(jnp.float32(fan_in))
        return jax.random.uniform(k, shape, jnp.float32, -bound, bound)

    return {
        "conv1_w": u(ks[0], (5, 5, 1, 6), 5 * 5 * 1),
        "conv1_b": u(ks[1], (6,), 5 * 5 * 1),
        "conv2_w": u(ks[2], (5, 5, 6, 16), 5 * 5 * 6),
        "conv2_b": u(ks[3], (16,), 5 * 5 * 6),
        "conv3_w": u(ks[4], (5, 5, 16, 120), 5 * 5 * 16),
        "conv3_b": u(ks[5], (120,), 5 * 5 * 16),
        "fc1_w": u(ks[6], (120, 84), 120),
        "fc1_b": u(ks[7], (84,), 120),
        "fc2_w": u(ks[8], (84, 10), 84),
        "fc2_b": u(ks[9], (10,), 84),
    }


# --------------------------- pure-JAX reference ------------------------------

def lenet_reference(params, x_nchw):
    x = jnp.transpose(jnp.asarray(x_nchw, jnp.float32), (0, 2, 3, 1))

    def conv(x, w, b, pad):
        y = jax.lax.conv_general_dilated(
            x, w, window_strides=(1, 1), padding=[(pad, pad), (pad, pad)],
            dimension_numbers=("NHWC", "HWIO", "NHWC"))
        return y + b

    def pool(x):
        return jax.lax.reduce_window(x, -jnp.inf, jax.lax.max,
                                     (1, 2, 2, 1), (1, 2, 2, 1), "VALID")

    x = pool(jax.nn.relu(conv(x, params["conv1_w"], params["conv1_b"], 2)))
    x = pool(jax.nn.relu(conv(x, params["conv2_w"], params["conv2_b"], 0)))
    x = jax.nn.relu(conv(x, params["conv3_w"], params["conv3_b"], 0))
    x = x.reshape(x.shape[0], -1)
    x = jax.nn.relu(x @ params["fc1_w"] + params["fc1_b"])
    x = x @ params["fc2_w"] + params["fc2_b"]
    return jax.nn.softmax(x, axis=-1)


if __name__ == "__main__":
    key = jax.random.PRNGKey(0)
    pkey, xkey = jax.random.split(key)
    params = init_params(pkey)
    prepped = prepare_params(params)          # one-time weight re-layout

    # LeNet expects 28x28 single-channel inputs (so conv3 collapses to 1x1).
    x = jax.random.normal(xkey, (2, 1, 28, 28), jnp.float32)

    out = jax.jit(lenet_forward)(prepped, x)
    out = jax.block_until_ready(out)

    assert out.shape == (2, 10)
    assert bool(jnp.all(jnp.isfinite(out)))
    assert bool(jnp.allclose(jnp.sum(out, axis=1), 1.0, atol=1e-4))

    ref = lenet_reference(params, x)
    assert bool(jnp.allclose(out, ref, atol=3e-2)), "mismatch vs pure-JAX reference"

    print("KERNEL_OK")
</pallas_src>

<mosaic_0001>
module attributes {stable_mosaic.version = 11 : i64} {
  func.func @_lenet_kernel(%arg0: i32, %arg1: memref<1x32x32xf32, #tpu.memory_space<vmem>>, %arg2: memref<5x32x168xf32, #tpu.memory_space<vmem>>, %arg3: memref<1x167xf32, #tpu.memory_space<vmem>>, %arg4: memref<14x27xf32, #tpu.memory_space<vmem>>, %arg5: memref<167x84xf32, #tpu.memory_space<vmem>>, %arg6: memref<5x84x160xf32, #tpu.memory_space<vmem>>, %arg7: memref<1x159xf32, #tpu.memory_space<vmem>>, %arg8: memref<5x9xf32, #tpu.memory_space<vmem>>, %arg9: memref<159x80xf32, #tpu.memory_space<vmem>>, %arg10: memref<5x80x120xf32, #tpu.memory_space<vmem>>, %arg11: memref<1x120xf32, #tpu.memory_space<vmem>>, %arg12: memref<120x84xf32, #tpu.memory_space<vmem>>, %arg13: memref<1x84xf32, #tpu.memory_space<vmem>>, %arg14: memref<84x10xf32, #tpu.memory_space<vmem>>, %arg15: memref<1x10xf32, #tpu.memory_space<vmem>>, %arg16: memref<1x1x10xf32, #tpu.memory_space<vmem>>) attributes {dimension_semantics = [#tpu.dimension_semantics<parallel>], iteration_bounds = array<i64: 2>, scalar_prefetch = 0 : i64, scratch_operands = 0 : i64, tpu.core_type = #tpu.core_type<tc>, window_params = [{transform_indices = @transform_0, window_bounds = array<i64: 1, 32, 32>}, {pipeline_mode = #tpu.pipeline_mode<synchronous>, transform_indices = @transform_1, window_bounds = array<i64: 5, 32, 168>}, {pipeline_mode = #tpu.pipeline_mode<synchronous>, transform_indices = @transform_2, window_bounds = array<i64: 1, 167>}, {pipeline_mode = #tpu.pipeline_mode<synchronous>, transform_indices = @transform_3, window_bounds = array<i64: 14, 27>}, {pipeline_mode = #tpu.pipeline_mode<synchronous>, transform_indices = @transform_4, window_bounds = array<i64: 167, 84>}, {pipeline_mode = #tpu.pipeline_mode<synchronous>, transform_indices = @transform_5, window_bounds = array<i64: 5, 84, 160>}, {pipeline_mode = #tpu.pipeline_mode<synchronous>, transform_indices = @transform_6, window_bounds = array<i64: 1, 159>}, {pipeline_mode = #tpu.pipeline_mode<synchronous>, transform_indices = @transform_7, window_bounds = array<i64: 5, 9>}, {pipeline_mode = #tpu.pipeline_mode<synchronous>, transform_indices = @transform_8, window_bounds = array<i64: 159, 80>}, {pipeline_mode = #tpu.pipeline_mode<synchronous>, transform_indices = @transform_9, window_bounds = array<i64: 5, 80, 120>}, {pipeline_mode = #tpu.pipeline_mode<synchronous>, transform_indices = @transform_10, window_bounds = array<i64: 1, 120>}, {pipeline_mode = #tpu.pipeline_mode<synchronous>, transform_indices = @transform_11, window_bounds = array<i64: 120, 84>}, {pipeline_mode = #tpu.pipeline_mode<synchronous>, transform_indices = @transform_12, window_bounds = array<i64: 1, 84>}, {pipeline_mode = #tpu.pipeline_mode<synchronous>, transform_indices = @transform_13, window_bounds = array<i64: 84, 10>}, {pipeline_mode = #tpu.pipeline_mode<synchronous>, transform_indices = @transform_14, window_bounds = array<i64: 1, 10>}, {transform_indices = @transform_15, window_bounds = array<i64: 1, 1, 10>}]} {
    %c0 = arith.constant 0 : index
    %c0_0 = arith.constant 0 : index
    %c0_1 = arith.constant 0 : index
    %0 = vector.load %arg1[%c0, %c0_0, %c0_1] : memref<1x32x32xf32, #tpu.memory_space<vmem>>, vector<1x32x32xf32>
    %1 = vector.shape_cast %0 : vector<1x32x32xf32> to vector<32x32xf32>
    %2 = vector.extract_strided_slice %1 {offsets = [0, 0], sizes = [28, 32], strides = [1, 1]} : vector<32x32xf32> to vector<28x32xf32>
    %c0_2 = arith.constant 0 : index
    %c0_3 = arith.constant 0 : index
    %c0_4 = arith.constant 0 : index
    %3 = vector.load %arg2[%c0_2, %c0_3, %c0_4] : memref<5x32x168xf32, #tpu.memory_space<vmem>>, vector<1x32x168xf32>
    %4 = vector.shape_cast %3 : vector<1x32x168xf32> to vector<32x168xf32>
    %cst = arith.constant dense<0.000000e+00> : vector<28x168xf32>
    %5 = tpu.matmul %2, %4, %cst {dimension_numbers = #tpu.dot_dimension_numbers<[1], [0], [0], [1], [0, 0, 1, 1], [], []>} : vector<28x32xf32>, vector<32x168xf32>, vector<28x168xf32> -> vector<28x168xf32>
    %6 = vector.extract_strided_slice %1 {offsets = [1, 0], sizes = [28, 32], strides = [1, 1]} : vector<32x32xf32> to vector<28x32xf32>
    %c1 = arith.constant 1 : index
    %c0_5 = arith.constant 0 : index
    %c0_6 = arith.constant 0 : index
    %7 = vector.load %arg2[%c1, %c0_5, %c0_6] : memref<5x32x168xf32, #tpu.memory_space<vmem>>, vector<1x32x168xf32>
    %8 = vector.shape_cast %7 : vector<1x32x168xf32> to vector<32x168xf32>
    %cst_7 = arith.constant dense<0.000000e+00> : vector<28x168xf32>
    %9 = tpu.matmul %6, %8, %cst_7 {dimension_numbers = #tpu.dot_dimension_numbers<[1], [0], [0], [1], [0, 0, 1, 1], [], []>} : vector<28x32xf32>, vector<32x168xf32>, vector<28x168xf32> -> vector<28x168xf32>
    %10 = arith.addf %5, %9 : vector<28x168xf32>
    %11 = vector.extract_strided_slice %1 {offsets = [2, 0], sizes = [28, 32], strides = [1, 1]} : vector<32x32xf32> to vector<28x32xf32>
    %c2 = arith.constant 2 : index
    %c0_8 = arith.constant 0 : index
    %c0_9 = arith.constant 0 : index
    %12 = vector.load %arg2[%c2, %c0_8, %c0_9] : memref<5x32x168xf32, #tpu.memory_space<vmem>>, vector<1x32x168xf32>
    %13 = vector.shape_cast %12 : vector<1x32x168xf32> to vector<32x168xf32>
    %cst_10 = arith.constant dense<0.000000e+00> : vector<28x168xf32>
    %14 = tpu.matmul %11, %13, %cst_10 {dimension_numbers = #tpu.dot_dimension_numbers<[1], [0], [0], [1], [0, 0, 1, 1], [], []>} : vector<28x32xf32>, vector<32x168xf32>, vector<28x168xf32> -> vector<28x168xf32>
    %15 = arith.addf %10, %14 : vector<28x168xf32>
    %16 = vector.extract_strided_slice %1 {offsets = [3, 0], sizes = [28, 32], strides = [1, 1]} : vector<32x32xf32> to vector<28x32xf32>
    %c3 = arith.constant 3 : index
    %c0_11 = arith.constant 0 : index
    %c0_12 = arith.constant 0 : index
    %17 = vector.load %arg2[%c3, %c0_11, %c0_12] : memref<5x32x168xf32, #tpu.memory_space<vmem>>, vector<1x32x168xf32>
    %18 = vector.shape_cast %17 : vector<1x32x168xf32> to vector<32x168xf32>
    %cst_13 = arith.constant dense<0.000000e+00> : vector<28x168xf32>
    %19 = tpu.matmul %16, %18, %cst_13 {dimension_numbers = #tpu.dot_dimension_numbers<[1], [0], [0], [1], [0, 0, 1, 1], [], []>} : vector<28x32xf32>, vector<32x168xf32>, vector<28x168xf32> -> vector<28x168xf32>
    %20 = arith.addf %15, %19 : vector<28x168xf32>
    %21 = vector.extract_strided_slice %1 {offsets = [4, 0], sizes = [28, 32], strides = [1, 1]} : vector<32x32xf32> to vector<28x32xf32>
    %c4 = arith.constant 4 : index
    %c0_14 = arith.constant 0 : index
    %c0_15 = arith.constant 0 : index
    %22 = vector.load %arg2[%c4, %c0_14, %c0_15] : memref<5x32x168xf32, #tpu.memory_space<vmem>>, vector<1x32x168xf32>
    %23 = vector.shape_cast %22 : vector<1x32x168xf32> to vector<32x168xf32>
    %cst_16 = arith.constant dense<0.000000e+00> : vector<28x168xf32>
    %24 = tpu.matmul %21, %23, %cst_16 {dimension_numbers = #tpu.dot_dimension_numbers<[1], [0], [0], [1], [0, 0, 1, 1], [], []>} : vector<28x32xf32>, vector<32x168xf32>, vector<28x168xf32> -> vector<28x168xf32>
    %25 = arith.addf %20, %24 : vector<28x168xf32>
    %26 = vector.extract_strided_slice %25 {offsets = [0, 0], sizes = [28, 167], strides = [1, 1]} : vector<28x168xf32> to vector<28x167xf32>
    %27 = vector.extract_strided_slice %25 {offsets = [0, 1], sizes = [28, 167], strides = [1, 1]} : vector<28x168xf32> to vector<28x167xf32>
    %28 = arith.maximumf %26, %27 : vector<28x167xf32>
    %29 = vector.extract_strided_slice %28 {offsets = [0, 0], sizes = [27, 167], strides = [1, 1]} : vector<28x167xf32> to vector<27x167xf32>
    %30 = vector.extract_strided_slice %28 {offsets = [1, 0], sizes = [27, 167], strides = [1, 1]} : vector<28x167xf32> to vector<27x167xf32>
    %31 = arith.maximumf %29, %30 : vector<27x167xf32>
    %c0_17 = arith.constant 0 : index
    %c0_18 = arith.constant 0 : index
    %32 = vector.load %arg3[%c0_17, %c0_18] : memref<1x167xf32, #tpu.memory_space<vmem>>, vector<1x167xf32>
    %33 = vector.broadcast %32 : vector<1x167xf32> to vector<27x167xf32>
    %34 = arith.addf %31, %33 : vector<27x167xf32>
    %cst_19 = arith.constant 0.000000e+00 : f32
    %35 = vector.broadcast %cst_19 : f32 to vector<27x167xf32>
    %36 = arith.maximumf %34, %35 : vector<27x167xf32>
    %c0_20 = arith.constant 0 : index
    %c0_21 = arith.constant 0 : index
    %37 = vector.load %arg4[%c0_20, %c0_21] : memref<14x27xf32, #tpu.memory_space<vmem>>, vector<14x27xf32>
    %c0_22 = arith.constant 0 : index
    %c0_23 = arith.constant 0 : index
    %38 = vector.load %arg5[%c0_22, %c0_23] : memref<167x84xf32, #tpu.memory_space<vmem>>, vector<167x84xf32>
    %cst_24 = arith.constant dense<0.000000e+00> : vector<27x84xf32>
    %39 = tpu.matmul %36, %38, %cst_24 {dimension_numbers = #tpu.dot_dimension_numbers<[1], [0], [0], [1], [0, 0, 1, 1], [], []>} : vector<27x167xf32>, vector<167x84xf32>, vector<27x84xf32> -> vector<27x84xf32>
    %cst_25 = arith.constant dense<0.000000e+00> : vector<14x84xf32>
    %40 = tpu.matmul %37, %39, %cst_25 {dimension_numbers = #tpu.dot_dimension_numbers<[1], [0], [0], [1], [0, 0, 1, 1], [], []>} : vector<14x27xf32>, vector<27x84xf32>, vector<14x84xf32> -> vector<14x84xf32>
    %41 = vector.extract_strided_slice %40 {offsets = [0, 0], sizes = [10, 84], strides = [1, 1]} : vector<14x84xf32> to vector<10x84xf32>
    %c0_26 = arith.constant 0 : index
    %c0_27 = arith.constant 0 : index
    %c0_28 = arith.constant 0 : index
    %42 = vector.load %arg6[%c0_26, %c0_27, %c0_28] : memref<5x84x160xf32, #tpu.memory_space<vmem>>, vector<1x84x160xf32>
    %43 = vector.shape_cast %42 : vector<1x84x160xf32> to vector<84x160xf32>
    %cst_29 = arith.constant dense<0.000000e+00> : vector<10x160xf32>
    %44 = tpu.matmul %41, %43, %cst_29 {dimension_numbers = #tpu.dot_dimension_numbers<[1], [0], [0], [1], [0, 0, 1, 1], [], []>} : vector<10x84xf32>, vector<84x160xf32>, vector<10x160xf32> -> vector<10x160xf32>
    %45 = vector.extract_strided_slice %40 {offsets = [1, 0], sizes = [10, 84], strides = [1, 1]} : vector<14x84xf32> to vector<10x84xf32>
    %c1_30 = arith.constant 1 : index
    %c0_31 = arith.constant 0 : index
    %c0_32 = arith.constant 0 : index
    %46 = vector.load %arg6[%c1_30, %c0_31, %c0_32] : memref<5x84x160xf32, #tpu.memory_space<vmem>>, vector<1x84x160xf32>
    %47 = vector.shape_cast %46 : vector<1x84x160xf32> to vector<84x160xf32>
    %cst_33 = arith.constant dense<0.000000e+00> : vector<10x160xf32>
    %48 = tpu.matmul %45, %47, %cst_33 {dimension_numbers = #tpu.dot_dimension_numbers<[1], [0], [0], [1], [0, 0, 1, 1], [], []>} : vector<10x84xf32>, vector<84x160xf32>, vector<10x160xf32> -> vector<10x160xf32>
    %49 = arith.addf %44, %48 : vector<10x160xf32>
    %50 = vector.extract_strided_slice %40 {offsets = [2, 0], sizes = [10, 84], strides = [1, 1]} : vector<14x84xf32> to vector<10x84xf32>
    %c2_34 = arith.constant 2 : index
    %c0_35 = arith.constant 0 : index
    %c0_36 = arith.constant 0 : index
    %51 = vector.load %arg6[%c2_34, %c0_35, %c0_36] : memref<5x84x160xf32, #tpu.memory_space<vmem>>, vector<1x84x160xf32>
    %52 = vector.shape_cast %51 : vector<1x84x160xf32> to vector<84x160xf32>
    %cst_37 = arith.constant dense<0.000000e+00> : vector<10x160xf32>
    %53 = tpu.matmul %50, %52, %cst_37 {dimension_numbers = #tpu.dot_dimension_numbers<[1], [0], [0], [1], [0, 0, 1, 1], [], []>} : vector<10x84xf32>, vector<84x160xf32>, vector<10x160xf32> -> vector<10x160xf32>
    %54 = arith.addf %49, %53 : vector<10x160xf32>
    %55 = vector.extract_strided_slice %40 {offsets = [3, 0], sizes = [10, 84], strides = [1, 1]} : vector<14x84xf32> to vector<10x84xf32>
    %c3_38 = arith.constant 3 : index
    %c0_39 = arith.constant 0 : index
    %c0_40 = arith.constant 0 : index
    %56 = vector.load %arg6[%c3_38, %c0_39, %c0_40] : memref<5x84x160xf32, #tpu.memory_space<vmem>>, vector<1x84x160xf32>
    %57 = vector.shape_cast %56 : vector<1x84x160xf32> to vector<84x160xf32>
    %cst_41 = arith.constant dense<0.000000e+00> : vector<10x160xf32>
    %58 = tpu.matmul %55, %57, %cst_41 {dimension_numbers = #tpu.dot_dimension_numbers<[1], [0], [0], [1], [0, 0, 1, 1], [], []>} : vector<10x84xf32>, vector<84x160xf32>, vector<10x160xf32> -> vector<10x160xf32>
    %59 = arith.addf %54, %58 : vector<10x160xf32>
    %60 = vector.extract_strided_slice %40 {offsets = [4, 0], sizes = [10, 84], strides = [1, 1]} : vector<14x84xf32> to vector<10x84xf32>
    %c4_42 = arith.constant 4 : index
    %c0_43 = arith.constant 0 : index
    %c0_44 = arith.constant 0 : index
    %61 = vector.load %arg6[%c4_42, %c0_43, %c0_44] : memref<5x84x160xf32, #tpu.memory_space<vmem>>, vector<1x84x160xf32>
    %62 = vector.shape_cast %61 : vector<1x84x160xf32> to vector<84x160xf32>
    %cst_45 = arith.constant dense<0.000000e+00> : vector<10x160xf32>
    %63 = tpu.matmul %60, %62, %cst_45 {dimension_numbers = #tpu.dot_dimension_numbers<[1], [0], [0], [1], [0, 0, 1, 1], [], []>} : vector<10x84xf32>, vector<84x160xf32>, vector<10x160xf32> -> vector<10x160xf32>
    %64 = arith.addf %59, %63 : vector<10x160xf32>
    %65 = vector.extract_strided_slice %64 {offsets = [0, 0], sizes = [10, 159], strides = [1, 1]} : vector<10x160xf32> to vector<10x159xf32>
    %66 = vector.extract_strided_slice %64 {offsets = [0, 1], sizes = [10, 159], strides = [1, 1]} : vector<10x160xf32> to vector<10x159xf32>
    %67 = arith.maximumf %65, %66 : vector<10x159xf32>
    %68 = vector.extract_strided_slice %67 {offsets = [0, 0], sizes = [9, 159], strides = [1, 1]} : vector<10x159xf32> to vector<9x159xf32>
    %69 = vector.extract_strided_slice %67 {offsets = [1, 0], sizes = [9, 159], strides = [1, 1]} : vector<10x159xf32> to vector<9x159xf32>
    %70 = arith.maximumf %68, %69 : vector<9x159xf32>
    %c0_46 = arith.constant 0 : index
    %c0_47 = arith.constant 0 : index
    %71 = vector.load %arg7[%c0_46, %c0_47] : memref<1x159xf32, #tpu.memory_space<vmem>>, vector<1x159xf32>
    %72 = vector.broadcast %71 : vector<1x159xf32> to vector<9x159xf32>
    %73 = arith.addf %70, %72 : vector<9x159xf32>
    %cst_48 = arith.constant 0.000000e+00 : f32
    %74 = vector.broadcast %cst_48 : f32 to vector<9x159xf32>
    %75 = arith.maximumf %73, %74 : vector<9x159xf32>
    %c0_49 = arith.constant 0 : index
    %c0_50 = arith.constant 0 : index
    %76 = vector.load %arg8[%c0_49, %c0_50] : memref<5x9xf32, #tpu.memory_space<vmem>>, vector<5x9xf32>
    %c0_51 = arith.constant 0 : index
    %c0_52 = arith.constant 0 : index
    %77 = vector.load %arg9[%c0_51, %c0_52] : memref<159x80xf32, #tpu.memory_space<vmem>>, vector<159x80xf32>
    %cst_53 = arith.constant dense<0.000000e+00> : vector<9x80xf32>
    %78 = tpu.matmul %75, %77, %cst_53 {dimension_numbers = #tpu.dot_dimension_numbers<[1], [0], [0], [1], [0, 0, 1, 1], [], []>} : vector<9x159xf32>, vector<159x80xf32>, vector<9x80xf32> -> vector<9x80xf32>
    %cst_54 = arith.constant dense<0.000000e+00> : vector<5x80xf32>
    %79 = tpu.matmul %76, %78, %cst_54 {dimension_numbers = #tpu.dot_dimension_numbers<[1], [0], [0], [1], [0, 0, 1, 1], [], []>} : vector<5x9xf32>, vector<9x80xf32>, vector<5x80xf32> -> vector<5x80xf32>
    %80 = vector.extract_strided_slice %79 {offsets = [0, 0], sizes = [1, 80], strides = [1, 1]} : vector<5x80xf32> to vector<1x80xf32>
    %c0_55 = arith.constant 0 : index
    %c0_56 = arith.constant 0 : index
    %c0_57 = arith.constant 0 : index
    %81 = vector.load %arg10[%c0_55, %c0_56, %c0_57] : memref<5x80x120xf32, #tpu.memory_space<vmem>>, vector<1x80x120xf32>
    %82 = vector.shape_cast %81 : vector<1x80x120xf32> to vector<80x120xf32>
    %cst_58 = arith.constant dense<0.000000e+00> : vector<1x120xf32>
    %83 = tpu.matmul %80, %82, %cst_58 {dimension_numbers = #tpu.dot_dimension_numbers<[1], [0], [0], [1], [0, 0, 1, 1], [], []>} : vector<1x80xf32>, vector<80x120xf32>, vector<1x120xf32> -> vector<1x120xf32>
    %84 = vector.extract_strided_slice %79 {offsets = [1, 0], sizes = [1, 80], strides = [1, 1]} : vector<5x80xf32> to vector<1x80xf32>
    %c1_59 = arith.constant 1 : index
    %c0_60 = arith.constant 0 : index
    %c0_61 = arith.constant 0 : index
    %85 = vector.load %arg10[%c1_59, %c0_60, %c0_61] : memref<5x80x120xf32, #tpu.memory_space<vmem>>, vector<1x80x120xf32>
    %86 = vector.shape_cast %85 : vector<1x80x120xf32> to vector<80x120xf32>
    %cst_62 = arith.constant dense<0.000000e+00> : vector<1x120xf32>
    %87 = tpu.matmul %84, %86, %cst_62 {dimension_numbers = #tpu.dot_dimension_numbers<[1], [0], [0], [1], [0, 0, 1, 1], [], []>} : vector<1x80xf32>, vector<80x120xf32>, vector<1x120xf32> -> vector<1x120xf32>
    %88 = arith.addf %83, %87 : vector<1x120xf32>
    %89 = vector.extract_strided_slice %79 {offsets = [2, 0], sizes = [1, 80], strides = [1, 1]} : vector<5x80xf32> to vector<1x80xf32>
    %c2_63 = arith.constant 2 : index
    %c0_64 = arith.constant 0 : index
    %c0_65 = arith.constant 0 : index
    %90 = vector.load %arg10[%c2_63, %c0_64, %c0_65] : memref<5x80x120xf32, #tpu.memory_space<vmem>>, vector<1x80x120xf32>
    %91 = vector.shape_cast %90 : vector<1x80x120xf32> to vector<80x120xf32>
    %cst_66 = arith.constant dense<0.000000e+00> : vector<1x120xf32>
    %92 = tpu.matmul %89, %91, %cst_66 {dimension_numbers = #tpu.dot_dimension_numbers<[1], [0], [0], [1], [0, 0, 1, 1], [], []>} : vector<1x80xf32>, vector<80x120xf32>, vector<1x120xf32> -> vector<1x120xf32>
    %93 = arith.addf %88, %92 : vector<1x120xf32>
    %94 = vector.extract_strided_slice %79 {offsets = [3, 0], sizes = [1, 80], strides = [1, 1]} : vector<5x80xf32> to vector<1x80xf32>
    %c3_67 = arith.constant 3 : index
    %c0_68 = arith.constant 0 : index
    %c0_69 = arith.constant 0 : index
    %95 = vector.load %arg10[%c3_67, %c0_68, %c0_69] : memref<5x80x120xf32, #tpu.memory_space<vmem>>, vector<1x80x120xf32>
    %96 = vector.shape_cast %95 : vector<1x80x120xf32> to vector<80x120xf32>
    %cst_70 = arith.constant dense<0.000000e+00> : vector<1x120xf32>
    %97 = tpu.matmul %94, %96, %cst_70 {dimension_numbers = #tpu.dot_dimension_numbers<[1], [0], [0], [1], [0, 0, 1, 1], [], []>} : vector<1x80xf32>, vector<80x120xf32>, vector<1x120xf32> -> vector<1x120xf32>
    %98 = arith.addf %93, %97 : vector<1x120xf32>
    %99 = vector.extract_strided_slice %79 {offsets = [4, 0], sizes = [1, 80], strides = [1, 1]} : vector<5x80xf32> to vector<1x80xf32>
    %c4_71 = arith.constant 4 : index
    %c0_72 = arith.constant 0 : index
    %c0_73 = arith.constant 0 : index
    %100 = vector.load %arg10[%c4_71, %c0_72, %c0_73] : memref<5x80x120xf32, #tpu.memory_space<vmem>>, vector<1x80x120xf32>
    %101 = vector.shape_cast %100 : vector<1x80x120xf32> to vector<80x120xf32>
    %cst_74 = arith.constant dense<0.000000e+00> : vector<1x120xf32>
    %102 = tpu.matmul %99, %101, %cst_74 {dimension_numbers = #tpu.dot_dimension_numbers<[1], [0], [0], [1], [0, 0, 1, 1], [], []>} : vector<1x80xf32>, vector<80x120xf32>, vector<1x120xf32> -> vector<1x120xf32>
    %103 = arith.addf %98, %102 : vector<1x120xf32>
    %c0_75 = arith.constant 0 : index
    %c0_76 = arith.constant 0 : index
    %104 = vector.load %arg11[%c0_75, %c0_76] : memref<1x120xf32, #tpu.memory_space<vmem>>, vector<1x120xf32>
    %105 = arith.addf %103, %104 : vector<1x120xf32>
    %cst_77 = arith.constant 0.000000e+00 : f32
    %106 = vector.broadcast %cst_77 : f32 to vector<1x120xf32>
    %107 = arith.maximumf %105, %106 : vector<1x120xf32>
    %c0_78 = arith.constant 0 : index
    %c0_79 = arith.constant 0 : index
    %108 = vector.load %arg12[%c0_78, %c0_79] : memref<120x84xf32, #tpu.memory_space<vmem>>, vector<120x84xf32>
    %cst_80 = arith.constant dense<0.000000e+00> : vector<1x84xf32>
    %109 = tpu.matmul %107, %108, %cst_80 {dimension_numbers = #tpu.dot_dimension_numbers<[1], [0], [0], [1], [0, 0, 1, 1], [], []>} : vector<1x120xf32>, vector<120x84xf32>, vector<1x84xf32> -> vector<1x84xf32>
    %c0_81 = arith.constant 0 : index
    %c0_82 = arith.constant 0 : index
    %110 = vector.load %arg13[%c0_81, %c0_82] : memref<1x84xf32, #tpu.memory_space<vmem>>, vector<1x84xf32>
    %111 = arith.addf %109, %110 : vector<1x84xf32>
    %cst_83 = arith.constant 0.000000e+00 : f32
    %112 = vector.broadcast %cst_83 : f32 to vector<1x84xf32>
    %113 = arith.maximumf %111, %112 : vector<1x84xf32>
    %c0_84 = arith.constant 0 : index
    %c0_85 = arith.constant 0 : index
    %114 = vector.load %arg14[%c0_84, %c0_85] : memref<84x10xf32, #tpu.memory_space<vmem>>, vector<84x10xf32>
    %cst_86 = arith.constant dense<0.000000e+00> : vector<1x10xf32>
    %115 = tpu.matmul %113, %114, %cst_86 {dimension_numbers = #tpu.dot_dimension_numbers<[1], [0], [0], [1], [0, 0, 1, 1], [], []>} : vector<1x84xf32>, vector<84x10xf32>, vector<1x10xf32> -> vector<1x10xf32>
    %c0_87 = arith.constant 0 : index
    %c0_88 = arith.constant 0 : index
    %116 = vector.load %arg15[%c0_87, %c0_88] : memref<1x10xf32, #tpu.memory_space<vmem>>, vector<1x10xf32>
    %117 = arith.addf %115, %116 : vector<1x10xf32>
    %cst_89 = arith.constant dense<0xFF800000> : vector<1xf32>
    %118 = vector.multi_reduction <maximumf>, %117, %cst_89 [1] : vector<1x10xf32> to vector<1xf32>
    %119 = vector.shape_cast %118 : vector<1xf32> to vector<1x1xf32>
    %120 = vector.broadcast %119 : vector<1x1xf32> to vector<1x10xf32>
    %121 = arith.subf %117, %120 : vector<1x10xf32>
    %122 = math.exp %121 : vector<1x10xf32>
    %cst_90 = arith.constant dense<0.000000e+00> : vector<1xf32>
    %123 = vector.multi_reduction <add>, %122, %cst_90 [1] : vector<1x10xf32> to vector<1xf32>
    %124 = vector.shape_cast %123 : vector<1xf32> to vector<1x1xf32>
    %125 = vector.broadcast %124 : vector<1x1xf32> to vector<1x10xf32>
    %126 = arith.divf %122, %125 : vector<1x10xf32>
    %c0_91 = arith.constant 0 : index
    %c0_92 = arith.constant 0 : index
    %c0_93 = arith.constant 0 : index
    %127 = vector.load %arg16[%c0_91, %c0_92, %c0_93] : memref<1x1x10xf32, #tpu.memory_space<vmem>>, vector<1x1x10xf32>
    %128 = vector.shape_cast %127 : vector<1x1x10xf32> to vector<1x10xf32>
    %129 = vector.shape_cast %126 : vector<1x10xf32> to vector<1x1x10xf32>
    tpu.vector_store %arg16[%c0_91, %c0_92, %c0_93], %129 {strides = array<i32>} : memref<1x1x10xf32, #tpu.memory_space<vmem>>, vector<1x1x10xf32>,
    return
  }
  func.func @transform_0(%arg0: i32) -> (i32, i32, i32) {
    %c0_i32 = arith.constant 0 : i32
    %c0_i32_0 = arith.constant 0 : i32
    %c0_i32_1 = arith.constant 0 : i32
    return %arg0, %c0_i32, %c0_i32_0 : i32, i32, i32
  }
  func.func @transform_1(%arg0: i32) -> (i32, i32, i32) {
    %c0_i32 = arith.constant 0 : i32
    %c0_i32_0 = arith.constant 0 : i32
    %c0_i32_1 = arith.constant 0 : i32
    %c0_i32_2 = arith.constant 0 : i32
    return %c0_i32, %c0_i32_0, %c0_i32_1 : i32, i32, i32
  }
  func.func @transform_2(%arg0: i32) -> (i32, i32) {
    %c0_i32 = arith.constant 0 : i32
    %c0_i32_0 = arith.constant 0 : i32
    %c0_i32_1 = arith.constant 0 : i32
    return %c0_i32, %c0_i32_0 : i32, i32
  }
  func.func @transform_3(%arg0: i32) -> (i32, i32) {
    %c0_i32 = arith.constant 0 : i32
    %c0_i32_0 = arith.constant 0 : i32
    %c0_i32_1 = arith.constant 0 : i32
    return %c0_i32, %c0_i32_0 : i32, i32
  }
  func.func @transform_4(%arg0: i32) -> (i32, i32) {
    %c0_i32 = arith.constant 0 : i32
    %c0_i32_0 = arith.constant 0 : i32
    %c0_i32_1 = arith.constant 0 : i32
    return %c0_i32, %c0_i32_0 : i32, i32
  }
  func.func @transform_5(%arg0: i32) -> (i32, i32, i32) {
    %c0_i32 = arith.constant 0 : i32
    %c0_i32_0 = arith.constant 0 : i32
    %c0_i32_1 = arith.constant 0 : i32
    %c0_i32_2 = arith.constant 0 : i32
    return %c0_i32, %c0_i32_0, %c0_i32_1 : i32, i32, i32
  }
  func.func @transform_6(%arg0: i32) -> (i32, i32) {
    %c0_i32 = arith.constant 0 : i32
    %c0_i32_0 = arith.constant 0 : i32
    %c0_i32_1 = arith.constant 0 : i32
    return %c0_i32, %c0_i32_0 : i32, i32
  }
  func.func @transform_7(%arg0: i32) -> (i32, i32) {
    %c0_i32 = arith.constant 0 : i32
    %c0_i32_0 = arith.constant 0 : i32
    %c0_i32_1 = arith.constant 0 : i32
    return %c0_i32, %c0_i32_0 : i32, i32
  }
  func.func @transform_8(%arg0: i32) -> (i32, i32) {
    %c0_i32 = arith.constant 0 : i32
    %c0_i32_0 = arith.constant 0 : i32
    %c0_i32_1 = arith.constant 0 : i32
    return %c0_i32, %c0_i32_0 : i32, i32
  }
  func.func @transform_9(%arg0: i32) -> (i32, i32, i32) {
    %c0_i32 = arith.constant 0 : i32
    %c0_i32_0 = arith.constant 0 : i32
    %c0_i32_1 = arith.constant 0 : i32
    %c0_i32_2 = arith.constant 0 : i32
    return %c0_i32, %c0_i32_0, %c0_i32_1 : i32, i32, i32
  }
  func.func @transform_10(%arg0: i32) -> (i32, i32) {
    %c0_i32 = arith.constant 0 : i32
    %c0_i32_0 = arith.constant 0 : i32
    %c0_i32_1 = arith.constant 0 : i32
    return %c0_i32, %c0_i32_0 : i32, i32
  }
  func.func @transform_11(%arg0: i32) -> (i32, i32) {
    %c0_i32 = arith.constant 0 : i32
    %c0_i32_0 = arith.constant 0 : i32
    %c0_i32_1 = arith.constant 0 : i32
    return %c0_i32, %c0_i32_0 : i32, i32
  }
  func.func @transform_12(%arg0: i32) -> (i32, i32) {
    %c0_i32 = arith.constant 0 : i32
    %c0_i32_0 = arith.constant 0 : i32
    %c0_i32_1 = arith.constant 0 : i32
    return %c0_i32, %c0_i32_0 : i32, i32
  }
  func.func @transform_13(%arg0: i32) -> (i32, i32) {
    %c0_i32 = arith.constant 0 : i32
    %c0_i32_0 = arith.constant 0 : i32
    %c0_i32_1 = arith.constant 0 : i32
    return %c0_i32, %c0_i32_0 : i32, i32
  }
  func.func @transform_14(%arg0: i32) -> (i32, i32) {
    %c0_i32 = arith.constant 0 : i32
    %c0_i32_0 = arith.constant 0 : i32
    %c0_i32_1 = arith.constant 0 : i32
    return %c0_i32, %c0_i32_0 : i32, i32
  }
  func.func @transform_15(%arg0: i32) -> (i32, i32, i32) {
    %c0_i32 = arith.constant 0 : i32
    %c0_i32_0 = arith.constant 0 : i32
    %c0_i32_1 = arith.constant 0 : i32
    return %arg0, %c0_i32, %c0_i32_0 : i32, i32, i32
  }
}

</mosaic_0001>

<bundles_post_ra>
// kernel: lenet_forward.1
= control target key start
LH: loop header
LB: loop body
LE: loop exit
PB: predicated region body
PF: predicated region fallthrough
CT: control target
= control target key end

     0   :  { %20 = vsyncpa [#allocation3], 0  ;;  %s4867_s0 = inlined_call_operand.vmem [shape: f32[2,32,32], index: 0, kind: input, shape index: {}]   ;;  %s4868_s1 = inlined_call_operand.vmem [shape: f32[5,32,168], index: 1, kind: input, shape index: {}]   ;;  %s4869_s2 = inlined_call_operand.vmem [shape: f32[1,167], index: 2, kind: input, shape index: {}]   ;;  %s4870_s3 = inlined_call_operand.vmem [shape: f32[14,27], index: 3, kind: input, shape index: {}]   ;;  %s4871_s4 = inlined_call_operand.vmem [shape: f32[167,84], index: 4, kind: input, shape index: {}]   ;;  %s4872_s5 = inlined_call_operand.vmem [shape: f32[5,84,160], index: 5, kind: input, shape index: {}]   ;;  %s4873_s6 = inlined_call_operand.vmem [shape: f32[1,159], index: 6, kind: input, shape index: {}]   ;;  %s4874_s7 = inlined_call_operand.vmem [shape: f32[5,9], index: 7, kind: input, shape index: {}]   ;;  %s4875_s8 = inlined_call_operand.vmem [shape: f32[159,80], index: 8, kind: input, shape index: {}]   ;;  %s4876_s9 = inlined_call_operand.vmem [shape: f32[5,80,120], index: 9, kind: input, shape index: {}]   ;;  %s4877_s10 = inlined_call_operand.vmem [shape: f32[1,120], index: 10, kind: input, shape index: {}]   ;;  %s4878_s11 = inlined_call_operand.vmem [shape: f32[120,84], index: 11, kind: input, shape index: {}]   ;;  %s4879_s12 = inlined_call_operand.vmem [shape: f32[1,84], index: 12, kind: input, shape index: {}]   ;;  %s4880_s13 = inlined_call_operand.vmem [shape: f32[84,10], index: 13, kind: input, shape index: {}]   ;;  %s4881_s14 = inlined_call_operand.vmem [shape: f32[1,10], index: 14, kind: input, shape index: {}]   ;;  %s4882_s15 = inlined_call_operand.hbm [shape: f32[2,1,10], index: 15, kind: output, shape index: {}]  }
   0x1   :  { %22 = vsyncpa [#allocation3 + $0x1], 0  ;;  %s3619_s18 = smov 0   ;;  %s3621_s19 = smov 0  }
   0x2   :  { %s3623_s20 = smov 0   ;;  %s3625_s21 = smov 0  }
   0x3 LB: > { %4889 = sst [smem:[#allocation5_spill]] %s3521_s18  ;;  %s3640_s22 = sadd.s32 4294967295, %s3533_s21   ;;  %s3533_s21 = sphi %s3625_s21, %s4900_s21   ;;  %s3529_s20 = sphi %s3623_s20, %s4902_s20   ;;  %s3525_s19 = sphi %s3621_s19, %s4904_s19   ;;  %s3521_s18 = sphi %s3619_s18, %s4903_s18  }
   0x4   : > { %4890 = sst [smem:[#allocation6_spill]] %s3529_s20  ;;  %s2913_s23 = sadd.s32 4294967294, %s3533_s21  }
   0x5   : > { %4891 = sst [smem:[#allocation7_spill]] %s3533_s21  ;;  %s3644_s24 = sadd.s32 1, %s3533_s21  }
   0x6   : > { %4892 = sst [smem:[#allocation8_spill]] %s3644_s24  ;;  %s355_s25 = sadd.s32 1, %s3529_s20 }
   0x7   : > { %s352_s26 = ssub.s32 %s3533_s21, %s3644_s24  ;;  %p365_p0 = scmp.ne.s32.totalorder %s3529_s20, %s3525_s19 }
   0x8   : > { %p353_p1 = scmp.eq.s32.totalorder %s352_s26, 0  ;;  %p366_p2 = scmp.eq.s32.totalorder %s3640_s22, 1 }
   0x9   : > { %p371_p3 = scmp.ne.s32.totalorder %s3525_s19, %s3521_s18  ;;  %p372_p4 = scmp.eq.s32.totalorder %s2913_s23, 1 }
   0xa   : > { %s3655_s27 = scalar_select %p353_p1, %s3529_s20, %s355_s25  }
   0xb   : > { %p3657_p5 = por %p366_p2, %p365_p0  ;;  %p3661_p6 = por %p372_p4, %p371_p3 }
   0xc   : > { %4893 = sst [smem:[#allocation9_spill]] %s3655_s27  ;;  %p2916_p7 = scmp.ge.s32.totalorder %s3533_s21, 1 }
   0xd   : > { %s4895_s29 = scalar_select %p3661_p6, 1, 0 }
   0xe   : > { %p440_p8 = scmp.lt.s32.totalorder %s3533_s21, 3 }
   0xf   : > { %4896 = sst [smem:[#allocation10_spill]] %s4895_s29 }
  0x10   : > { %p441_p9 = pnand %p2916_p7, %p440_p8 }
  0x11   : > { %p487_p10 = scmp.lt.s32.totalorder (!%p441_p9), %s3640_s22, 1  ;;  %s3536_s21 = smov (!%p441_p9), 127  }
  0x12   : > { %444 = sbr.rel (%p441_p9) target bundleno = 2534 (0x9e6), region = 80  ;;  %s485_s20 = sand.u32 (!%p441_p9), 1, %s3525_s19  }
  0x13   : > { %s3140_s27 = sshll.u32 (!%p441_p9), %s3640_s22, 4  ;;  %s2846_s23 = scalar_lea.sflag (!%p441_p9), [#allocation3], %s485_s20 }
  0x14   : > { %s2856_s17 = scalar_lea.hbm (!%p441_p9), %s4882_s15, %s3140_s27 }
  0x17   : > { %v2926_v0 = vld [vmem:[%s4868_s1 + $0x78] sm:$0xff]  ;;  %v2925_v2 = vld [vmem:[%s4868_s1 + $0x70] sm:$0xff]  ;;  %v2924_v4 = vld [vmem:[%s4868_s1 + $0x68] sm:$0xff]  ;;  %s488_s24 = scalar_select %p487_p10, %s3640_s22, 1  ;;  %vm517_vm0 = vcmask 1046528   ;;  %vm525_vm1 = vcmask 261120  }
  0x18   : > { %v503_v1 = vld [vmem:[%s4868_s1 + $0x38] sm:$0xff]  ;;  %558 = vmatprep.subr.mxu0 %v2926_v0  ;;  %v502_v3 = vld [vmem:[%s4868_s1 + $0x30] sm:$0xff]  ;;  %v501_v5 = vld [vmem:[%s4868_s1 + $0x28] sm:$0xff]  ;;  %v3535_v22 = vmov 0.0   ;;  %vm729_vm2 = vcmask 1045504   ;;  %vm851_vm3 = vcmask 1044480  }
  0x19   : > { %655 = vmatprep.subr.mxu1 %v503_v1  ;;  %559 = vmatpush1.msra.mxu0 %v2925_v2  ;;  %v2923_v6 = vld [vmem:[%s4868_s1 + $0x60] sm:$0xff]  ;;  %v2922_v8 = vld [vmem:[%s4868_s1 + $0x58] sm:$0xff]  ;;  %v2921_v10 = vld [vmem:[%s4868_s1 + $0x50] sm:$0xff]  ;;  %s3143_s30 = sshll.u32 %s488_s24, 5  ;;  %vm973_vm4 = vcmask 1043456   ;;  %vm1110_vm5 = vcmask 1039360  }
  0x1a   : > { %656 = vmatpush1.msra.mxu1 %v502_v3  ;;  %v500_v7 = vld [vmem:[%s4868_s1 + $0x20] sm:$0xff]  ;;  %560 = vmatprep.subr.mxu0 %v2924_v4  ;;  %v499_v9 = vld [vmem:[%s4868_s1 + $0x18] sm:$0xff]  ;;  %v498_v11 = vld [vmem:[%s4868_s1 + $0x10] sm:$0xff]  ;;  %s491_s25 = scalar_lea.vmem %s4867_s0, %s3143_s30  ;;  %vm1220_vm6 = vcmask 318464   ;;  %vm1321_vm7 = vcmask 220160   ;;  %vm1328_vm8 = vcmask 1042432  }
  0x1b   : > { %657 = vmatprep.subr.mxu1 %v501_v5  ;;  %561 = vmatpush1.msra.mxu0 %v2923_v6  ;;  %v2920_v12 = vld [vmem:[%s4868_s1 + $0x48] sm:$0xff]  ;;  %v2919_v14 = vld [vmem:[%s4868_s1 + $0x40] sm:$0xff]  ;;  %v3724_v18 = vld [vmem:[%s491_s25 + $0x10] sm:$0xff]  ;;  %vm1457_vm9 = vcmask 687104   ;;  %vm2064_vm10 = vcmask 252928   ;;  %vm3537_vm11 = vmmov 0  }
  0x1c   : > { %658 = vmatpush1.msra.mxu1 %v500_v7  ;;  %v497_v13 = vld [vmem:[%s4868_s1 + $0x8] sm:$0xff]  ;;  %562 = vmatprep.subr.mxu0 %v2922_v8  ;;  %v496_v15 = vld [vmem:[%s4868_s1] sm:$0xff]  ;;  %v521_v21 = vrot.slane %v3724_v18, 1  ;;  %v3730_v23 = vld [vmem:[%s491_s25 + $0x18] sm:$0xff]  ;;  %v733_v50 = vrot.slane %v3724_v18, 2  ;;  %v855_v51 = vrot.slane %v3724_v18, 3 }
  0x1d   : > { %659 = vmatprep.subr.mxu1 %v499_v9  ;;  %563 = vmatpush1.msra.mxu0 %v2921_v10  ;;  %v3720_v16 = vld [vmem:[%s491_s25] sm:$0xff]  ;;  %v3722_v17 = vld [vmem:[%s491_s25 + $0x8] sm:$0xff]  ;;  %v2942_v25 = vld [vmem:[%s4868_s1 + $0xb8] sm:$0xff]  ;;  %v523_v30 = vrot.slane %v3730_v23, 1  ;;  %v735_v56 = vrot.slane %v3730_v23, 2  ;;  %v857_v57 = vrot.slane %v3730_v23, 3 }
  0x1e   : > { %660 = vmatpush1.msra.mxu1 %v498_v11  ;;  %564 = vmatprep.subr.mxu0 %v2920_v12  ;;  %v518_v19 = vrot.slane %v3720_v16, 1  ;;  %v519_v20 = vrot.slane %v3722_v17, 1  ;;  %v2954_v26 = vld [vmem:[%s4868_s1 + $0xf8] sm:$0xff]  ;;  %v2941_v27 = vld [vmem:[%s4868_s1 + $0xb0] sm:$0xff]  ;;  %v2940_v31 = vld [vmem:[%s4868_s1 + $0xa8] sm:$0xff]  ;;  %v730_v40 = vrot.slane %v3720_v16, 2 }
  0x1f   : > { %661 = vmatprep.subr.mxu1 %v497_v13  ;;  %565 = vmatpush1.msra.mxu0 %v2919_v14  ;;  %v2953_v28 = vld [vmem:[%s4868_s1 + $0xf0] sm:$0xff]  ;;  %v2952_v32 = vld [vmem:[%s4868_s1 + $0xe8] sm:$0xff]  ;;  %v2939_v33 = vld [vmem:[%s4868_s1 + $0xa0] sm:$0xff]  ;;  %v524_v35 = vsel %vm517_vm0, %v521_v21, %v523_v30  ;;  %v731_v41 = vrot.slane %v3722_v17, 2  ;;  %v852_v42 = vrot.slane %v3720_v16, 3  ;;  %v853_v43 = vrot.slane %v3722_v17, 3 }
  0x20   : > { %598 = vmatprep.mubr.f32.mxu0 %v3535_v22  ;;  %662 = vmatpush1.msra.mxu1 %v496_v15  ;;  %v520_v24 = vsel %vm517_vm0, %v518_v19, %v519_v20  ;;  %v522_v29 = vsel %vm517_vm0, %v519_v20, %v521_v21  ;;  %v2951_v34 = vld [vmem:[%s4868_s1 + $0xe0] sm:$0xff]  ;;  %v2938_v36 = vld [vmem:[%s4868_s1 + $0x98] sm:$0xff]  ;;  %v2937_v38 = vld [vmem:[%s4868_s1 + $0x90] sm:$0xff]  ;;  %v736_v60 = vsel %vm729_vm2, %v733_v50, %v735_v56  ;;  %v974_v1 = vrot.slane %v3720_v16, 4  ;;  %s486_s30 = scalar_lea.vmem [#allocation2], %s485_s20  ;;  %s3538_s25 = smov [#allocation2]  }
  0x21   : > { %695 = vmatprep.mubr.f32.mxu1 %v3535_v22  ;;  %2927 = vmatmul.mubr.msk.f32.vlgmr.msra.gmra.mxu0 %vm525_vm1, %v520_v24  ;;  %v2950_v37 = vld [vmem:[%s4868_s1 + $0xd8] sm:$0xff]  ;;  %v2949_v39 = vld [vmem:[%s4868_s1 + $0xd0] sm:$0xff]  ;;  %v2936_v44 = vld [vmem:[%s4868_s1 + $0x88] sm:$0xff]  ;;  %v732_v48 = vsel %vm729_vm2, %v730_v40, %v731_v41  ;;  %v854_v49 = vsel %vm851_vm3, %v852_v42, %v853_v43  ;;  %v734_v54 = vsel %vm729_vm2, %v731_v41, %v733_v50  ;;  %v975_v2 = vrot.slane %v3722_v17, 4  ;;  %s2858_s29 = sshll.u32 %s486_s30, 4  ;;  %s3477_s24 = sshll.u32 %s3538_s25, 4  ;;  %s2859_s29 = int_to_ptr.vmem [resolvable:$true] %s2858_s29  ;;  %s3478_s24 = int_to_ptr.vmem [resolvable:$false] %s3477_s24 }
  0x22   : > { %2931 = vmatmul.mubr.msk.f32.vlgmr.msra.gmra.mxu1 %vm525_vm1, %v3720_v16  ;;  %604 = vmatprep.mubr.f32.mxu0 %v3535_v22  ;;  %v2935_v45 = vld [vmem:[%s4868_s1 + $0x80] sm:$0xff]  ;;  %v2948_v46 = vld [vmem:[%s4868_s1 + $0xc8] sm:$0xff]  ;;  %v2966_v52 = vld [vmem:[%s4868_s1 + $0x138] sm:$0xff]  ;;  %v856_v55 = vsel %vm851_vm3, %v853_v43, %v855_v51  ;;  %v858_v61 = vsel %vm851_vm3, %v855_v51, %v857_v57  ;;  %v977_v5 = vrot.slane %v3724_v18, 4  ;;  %v979_v7 = vrot.slane %v3730_v23, 4  ;;  %s3479_s22 = scalar_lea.vmem %s3478_s24, 32  ;;  %p3480_p0 = scmp.lt.s32.totalorder %s2859_s29, %s3478_s24 }
  0x23   : > { %701 = vmatprep.mubr.f32.mxu1 %v3535_v22  ;;  %769 = vmatprep.subr.mxu0 %v2942_v25  ;;  %v2947_v47 = vld [vmem:[%s4868_s1 + $0xc0] sm:$0xff]  ;;  %v2965_v53 = vld [vmem:[%s4868_s1 + $0x130] sm:$0xff]  ;;  %v2964_v58 = vld [vmem:[%s4868_s1 + $0x128] sm:$0xff]  ;;  %v976_v4 = vsel %vm973_vm4, %v974_v1, %v975_v2  ;;  %vm2153_vm12 = vcmask 1040384   ;;  %vm2149_vm13 = vcmask 72704   ;;  %vm2250_vm14 = vcmask 654336  }
  0x24   : > { %891 = vmatprep.subr.mxu1 %v2954_v26  ;;  %770 = vmatpush1.msra.mxu0 %v2941_v27  ;;  %v2963_v59 = vld [vmem:[%s4868_s1 + $0x120] sm:$0xff]  ;;  %v2962_v62 = vld [vmem:[%s4868_s1 + $0x118] sm:$0xff]  ;;  %v2961_v63 = vld [vmem:[%s4868_s1 + $0x110] sm:$0xff]  ;;  %v978_v6 = vsel %vm973_vm4, %v975_v2, %v977_v5  ;;  %v980_v8 = vsel %vm973_vm4, %v977_v5, %v979_v7  ;;  %vm2669_vm15 = vcmask 982016  }
  0x25   : > { %892 = vmatpush1.msra.mxu1 %v2953_v28  ;;  %2928 = vmatmul.mubr.msk.f32.gmra.mxu0 %vm525_vm1, %v522_v29  ;;  %v2960_v0 = vld [vmem:[%s4868_s1 + $0x108] sm:$0xff]  ;;  %v2959_v3 = vld [vmem:[%s4868_s1 + $0x100] sm:$0xff]  ;;  %v1214_v9 = vld [vmem:[%s4871_s4 + $0x78] sm:$0xff] }
  0x26   : > { %2932 = vmatmul.mubr.msk.f32.gmra.mxu1 %vm525_vm1, %v3722_v17  ;;  %610 = vmatprep.mubr.f32.mxu0 %v3535_v22  ;;  %v1213_v10 = vld [vmem:[%s4871_s4 + $0x70] sm:$0xff]  ;;  %v1212_v11 = vld [vmem:[%s4871_s4 + $0x68] sm:$0xff]  ;;  %v1211_v12 = vld [vmem:[%s4871_s4 + $0x60] sm:$0xff] }
  0x27   : > { %707 = vmatprep.mubr.f32.mxu1 %v3535_v22  ;;  %771 = vmatprep.subr.mxu0 %v2940_v31  ;;  %v1210_v13 = vld [vmem:[%s4871_s4 + $0x58] sm:$0xff]  ;;  %v1209_v14 = vld [vmem:[%s4871_s4 + $0x50] sm:$0xff]  ;;  %v1208_v15 = vld [vmem:[%s4871_s4 + $0x48] sm:$0xff] }
  0x28   : > { %893 = vmatprep.subr.mxu1 %v2952_v32  ;;  %772 = vmatpush1.msra.mxu0 %v2939_v33  ;;  %v1207_v16 = vld [vmem:[%s4871_s4 + $0x40] sm:$0xff]  ;;  %v1206_v17 = vld [vmem:[%s4871_s4 + $0x38] sm:$0xff]  ;;  %v1204_v19 = vld [vmem:[%s4871_s4 + $0x28] sm:$0xff] }
  0x29   : > { %894 = vmatpush1.msra.mxu1 %v2951_v34  ;;  %2929 = vmatmul.mubr.msk.f32.gmra.mxu0 %vm525_vm1, %v524_v35  ;;  %v1203_v42 = vld [vmem:[%s4871_s4 + $0x20] sm:$0xff]  ;;  %v1202_v43 = vld [vmem:[%s4871_s4 + $0x18] sm:$0xff] }
  0x2a   : > { %2933 = vmatmul.mubr.msk.f32.gmra.mxu1 %vm525_vm1, %v3724_v18  ;;  %616 = vmatprep.mubr.f32.mxu0 %v3535_v22  ;;  %v1205_v18 = vld [vmem:[%s4871_s4 + $0x30] sm:$0xff]  ;;  %v1218_v5 = vld [vmem:[%s4871_s4 + $0x98] sm:$0xff] }
  0x2b   : > { %713 = vmatprep.mubr.f32.mxu1 %v3535_v22  ;;  %773 = vmatprep.subr.mxu0 %v2938_v36 }
  0x2c   : > { %895 = vmatprep.subr.mxu1 %v2950_v37  ;;  %774 = vmatpush1.msra.mxu0 %v2937_v38 }
  0x2d   : > { %896 = vmatpush1.msra.mxu1 %v2949_v39  ;;  %2930 = vmatmul.mubr.msk.f32.gmra.mxu0 %vm525_vm1, %v523_v30 }
  0x2e   : > { %2934 = vmatmul.mubr.msk.f32.gmra.mxu1 %vm525_vm1, %v3730_v23  ;;  %775 = vmatprep.subr.mxu0 %v2936_v44 }
  0x2f   : > { %809 = vmatprep.mubr.f32.mxu0 %v3535_v22  ;;  %776 = vmatpush1.msra.mxu0 %v2935_v45 }
  0x30   : > { %897 = vmatprep.subr.mxu1 %v2948_v46  ;;  %931 = vmatprep.mubr.f32.mxu1 %v3535_v22 }
  0x31   : > { %898 = vmatpush1.msra.mxu1 %v2947_v47  ;;  %2943 = vmatmul.mubr.msk.f32.vlgmr.msra.gmra.mxu0 %vm525_vm1, %v732_v48 }
  0x32   : > { %2955 = vmatmul.mubr.msk.f32.vlgmr.msra.gmra.mxu1 %vm525_vm1, %v854_v49  ;;  %815 = vmatprep.mubr.f32.mxu0 %v3535_v22  ;;  %v1201_v49 = vld [vmem:[%s4871_s4 + $0x10] sm:$0xff] }
  0x33   : > { %937 = vmatprep.mubr.f32.mxu1 %v3535_v22  ;;  %1013 = vmatprep.subr.mxu0 %v2966_v52 }
  0x34   : > { %1236 = vmatprep.subr.mxu1 %v3535_v22  ;;  %1014 = vmatpush1.msra.mxu0 %v2965_v53  ;;  %v1200_v53 = vld [vmem:[%s4871_s4 + $0x8] sm:$0xff] }
  0x35   : > { %2944 = vmatmul.mubr.msk.f32.gmra.mxu0 %vm525_vm1, %v734_v54  ;;  %1015 = vmatprep.subr.mxu0 %v2964_v58 }
  0x36   : > { %2956 = vmatmul.mubr.msk.f32.gmra.mxu1 %vm525_vm1, %v856_v55  ;;  %821 = vmatprep.mubr.f32.mxu0 %v3535_v22 }
  0x37   : > { %943 = vmatprep.mubr.f32.mxu1 %v3535_v22  ;;  %1016 = vmatpush1.msra.mxu0 %v2963_v59 }
  0x38   : > { %1017 = vmatprep.subr.mxu0 %v2962_v62  ;;  %1237 = vmatpush1.msra.mxu1 %v1214_v9 }
  0x39   : > { %2945 = vmatmul.mubr.msk.f32.gmra.mxu0 %vm525_vm1, %v736_v60  ;;  %1238 = vmatprep.subr.mxu1 %v3535_v22 }
  0x3a   : > { %2957 = vmatmul.mubr.msk.f32.gmra.mxu1 %vm525_vm1, %v858_v61  ;;  %827 = vmatprep.mubr.f32.mxu0 %v3535_v22 }
  0x3b   : > { %949 = vmatprep.mubr.f32.mxu1 %v3535_v22  ;;  %1018 = vmatpush1.msra.mxu0 %v2961_v63 }
  0x3c   : > { %1019 = vmatprep.subr.mxu0 %v2960_v0  ;;  %1239 = vmatpush1.msra.mxu1 %v1213_v10  ;;  %v1219_v0 = vld [vmem:[%s4871_s4 + $0xa0] sm:$0x7f] }
  0x3d   : > { %2946 = vmatmul.mubr.msk.f32.gmra.mxu0 %vm525_vm1, %v735_v56  ;;  %1240 = vmatprep.subr.mxu1 %v3535_v22 }
  0x3e   : > { %2958 = vmatmul.mubr.msk.f32.gmra.mxu1 %vm525_vm1, %v857_v57  ;;  %1020 = vmatpush1.msra.mxu0 %v2959_v3  ;;  %v1199_v57 = vld [vmem:[%s4871_s4] sm:$0xff] }
  0x3f   : > { %1053 = vmatprep.mubr.f32.mxu0 %v3535_v22  ;;  %1241 = vmatpush1.msra.mxu1 %v1212_v11  ;;  %v1217_v11 = vld [vmem:[%s4871_s4 + $0x90] sm:$0xff] }
  0x40   : > { %1242 = vmatprep.subr.mxu1 %v3535_v22 }
  0x41   : > { %2967 = vmatmul.mubr.msk.f32.vlgmr.msra.gmra.mxu0 %vm525_vm1, %v976_v4  ;;  %1243 = vmatpush1.msra.mxu1 %v1211_v12 }
  0x42   : > { %1059 = vmatprep.mubr.f32.mxu0 %v3535_v22  ;;  %1244 = vmatprep.subr.mxu1 %v3535_v22 }
  0x43   : > { %1245 = vmatpush1.msra.mxu1 %v1210_v13 }
  0x44   : > { %1246 = vmatprep.subr.mxu1 %v3535_v22 }
  0x45   : > { %2968 = vmatmul.mubr.msk.f32.gmra.mxu0 %vm525_vm1, %v978_v6  ;;  %1247 = vmatpush1.msra.mxu1 %v1209_v14 }
  0x46   : > { %1065 = vmatprep.mubr.f32.mxu0 %v3535_v22  ;;  %1248 = vmatprep.subr.mxu1 %v3535_v22 }
  0x47   : > { %1249 = vmatpush1.msra.mxu1 %v1208_v15 }
  0x48   : > { %1250 = vmatprep.subr.mxu1 %v3535_v22 }
  0x49   : > { %2969 = vmatmul.mubr.msk.f32.gmra.mxu0 %vm525_vm1, %v980_v8  ;;  %1251 = vmatpush1.msra.mxu1 %v1207_v16 }
  0x4a   : > { %1071 = vmatprep.mubr.f32.mxu0 %v3535_v22  ;;  %1252 = vmatprep.subr.mxu1 %v3535_v22 }
  0x4b   : > { %1253 = vmatpush1.msra.mxu1 %v1206_v17 }
  0x4c   : > { %1254 = vmatprep.subr.mxu1 %v3535_v22 }
  0x4d   : > { %2970 = vmatmul.mubr.msk.f32.gmra.mxu0 %vm525_vm1, %v979_v7  ;;  %1255 = vmatpush1.msra.mxu1 %v1205_v18  ;;  %v1216_v18 = vld [vmem:[%s4871_s4 + $0x88] sm:$0xff] }
  0x4e   : > { %1256 = vmatprep.subr.mxu1 %v3535_v22 }
  0x4f   : > { %1257 = vmatpush1.msra.mxu1 %v1204_v19 }
  0x50   : > { %1258 = vmatprep.subr.mxu1 %v3535_v22 }
  0x51   : > { %1259 = vmatpush1.msra.mxu1 %v1203_v42 }
  0x52   : > { %1260 = vmatprep.subr.mxu1 %v3535_v22 }
  0x53   : > { %1261 = vmatpush1.msra.mxu1 %v1202_v43 }
  0x54   : > { %1262 = vmatprep.subr.mxu1 %v3535_v22 }
  0x55   : > { %1263 = vmatpush1.msra.mxu1 %v1201_v49 }
  0x56   : > { %1264 = vmatprep.subr.mxu1 %v3535_v22 }
  0x57   : > { %1265 = vmatpush1.msra.mxu1 %v1200_v53 }
  0x58   : > { %1266 = vmatprep.subr.mxu1 %v3535_v22 }
  0x59   : > { %1267 = vmatpush1.msra.mxu1 %v1199_v57 }
  0x5a   : > { %1290 = vmatprep.subr.mxu1 %v3535_v22 }
  0x5b   : > { %2971 = vmatpush2.msk.msra.mxu1 %vm517_vm0, %v1219_v0 }
  0x5c   : > { %1292 = vmatprep.subr.mxu1 %v3535_v22 }
  0x5d   : > { %1293 = vmatpush2.msra.mxu1 %v1218_v5 }
  0x5e   : > { %1294 = vmatprep.subr.mxu1 %v3535_v22 }
  0x5f   : > { %1295 = vmatpush2.msra.mxu1 %v1217_v11 }
  0x60   : > { %1296 = vmatprep.subr.mxu1 %v3535_v22 }
  0x61   : > { %1297 = vmatpush2.msra.mxu1 %v1216_v18 }
  0x62   : > { %1298 = vmatprep.subr.mxu1 %v3535_v22 }
  0xe1   : > { %v600_v20 = vpop.f32.mrf.mxu0 }
  0xe2   : > { %v697_v21 = vpop.f32.mrf.mxu1 }
  0xe3   : > { %v602_v23 = vpop.f32.mrf.mxu0  ;;  %v698_v47 = vadd.f32 %v697_v21, %v600_v20 }
  0xe4   : > { %v699_v24 = vpop.f32.mrf.mxu1 }
  0xe5   : > { %v606_v25 = vpop.f32.mrf.mxu0  ;;  %v700_v54 = vadd.f32 %v699_v24, %v602_v23 }
  0xe6   : > { %v703_v26 = vpop.f32.mrf.mxu1 }
  0xe7   : > { %v608_v27 = vpop.f32.mrf.mxu0  ;;  %v704_v55 = vadd.f32 %v703_v26, %v606_v25  ;;  %v1215_v25 = vld [vmem:[%s4871_s4 + $0x80] sm:$0xff] }
  0xe8   : > { %v705_v28 = vpop.f32.mrf.mxu1  ;;  %1299 = vmatpush2.msra.mxu1 %v1215_v25 }
  0xe9   : > { %v612_v29 = vpop.f32.mrf.mxu0  ;;  %v706_v61 = vadd.f32 %v705_v28, %v608_v27 }
  0xea   : > { %v709_v30 = vpop.f32.mrf.mxu1 }
  0xeb   : > { %v614_v31 = vpop.f32.mrf.mxu0  ;;  %v710_v1 = vadd.f32 %v709_v30, %v612_v29 }
  0xec   : > { %v711_v32 = vpop.f32.mrf.mxu1 }
  0xed   : > { %v618_v33 = vpop.f32.mrf.mxu0  ;;  %v712_v12 = vadd.f32 %v711_v32, %v614_v31 }
  0xee   : > { %v715_v34 = vpop.f32.mrf.mxu1 }
  0xef   : > { %v3917_v35 = vpop.f32.mrf.mxu0  ;;  %v716_v13 = vadd.f32 %v715_v34, %v618_v33 }
  0xf0   : > { %v3919_v36 = vpop.f32.mrf.mxu1 }
  0xf1   : > { %v811_v37 = vpop.f32.mrf.mxu0  ;;  %v718_v26 = vadd.f32 %v3919_v36, %v3917_v35 }
  0xf2   : > { %v933_v38 = vpop.f32.mrf.mxu1  ;;  %v834_v50 = vadd.f32 %v811_v37, %v698_v47 }
  0xf3   : > { %v813_v39 = vpop.f32.mrf.mxu0 }
  0xf4   : > { %v935_v41 = vpop.f32.mrf.mxu1  ;;  %v835_v58 = vadd.f32 %v813_v39, %v700_v54  ;;  %v956_v59 = vadd.f32 %v933_v38, %v834_v50  ;;  %v1169_v50 = vld [vmem:[%s4869_s2] sm:$0x3] }
  0xf5   : > { %v817_v40 = vpop.f32.mrf.mxu0 }
  0xf6   : > { %v939_v45 = vpop.f32.mrf.mxu1  ;;  %v836_v60 = vadd.f32 %v817_v40, %v704_v55  ;;  %v957_v6 = vadd.f32 %v935_v41, %v835_v58  ;;  %v1171_v41 = vlaneseq }
  0xf7   : > { %v819_v44 = vpop.f32.mrf.mxu0 }
  0xf8   : > { %v941_v51 = vpop.f32.mrf.mxu1  ;;  %v837_v3 = vadd.f32 %v819_v44, %v706_v61  ;;  %v958_v7 = vadd.f32 %v939_v45, %v836_v60  ;;  %v3974_v44 = vshrl.u32 %v1171_v41, 7 }
  0xf9   : > { %v823_v46 = vpop.f32.mrf.mxu0 }
  0xfa   : > { %v945_v62 = vpop.f32.mrf.mxu1  ;;  %v838_v8 = vadd.f32 %v823_v46, %v710_v1  ;;  %v959_v16 = vadd.f32 %v941_v51, %v837_v3  ;;  %v1177_v49 = vsub.s32 1, %v3974_v44  ;;  %v1173_v51 = vsub.s32 0, %v3974_v44 }
  0xfb   : > { %v825_v48 = vpop.f32.mrf.mxu0 }
  0xfc   : > { %v947_v9 = vpop.f32.mrf.mxu1  ;;  %v839_v19 = vadd.f32 %v825_v48, %v712_v12  ;;  %v960_v20 = vadd.f32 %v945_v62, %v838_v8  ;;  %v1178_v61 = vrot.slane %v1169_v50, %v1177_v49  ;;  %v1174_v62 = vrot.slane %v1169_v50, %v1173_v51  ;;  %v1423_v50 = vld [vmem:[%s4872_s5 + $0x80] sm:$0xff] }
  0xfd   : > { %v829_v52 = vpop.f32.mrf.mxu0 }
  0xfe   : > { %v840_v21 = vadd.f32 %v829_v52, %v716_v13  ;;  %v951_v23 = vpop.f32.mrf.mxu1  ;;  %v961_v30 = vadd.f32 %v947_v9, %v839_v19 }
  0xff   : > { %v831_v56 = vpop.f32.mrf.mxu0 }
 0x100   : > { %v841_v31 = vadd.f32 %v831_v56, %v718_v26  ;;  %v962_v32 = vadd.f32 %v951_v23, %v840_v21  ;;  %v953_v33 = vpop.f32.mrf.mxu1 }
 0x101   : > { %v1055_v63 = vpop.f32.mrf.mxu0 }
 0x102   : > { %v3944_v2 = vadd.f32 %v1055_v63, %v956_v59  ;;  %v963_v40 = vadd.f32 %v953_v33, %v841_v31 }
 0x103   : > { %v1057_v4 = vpop.f32.mrf.mxu0 }
 0x104   : > { %1094 = vrot.lane.b32.xlu0 %v3944_v2, %s3536_s21  ;;  %v1079_v14 = vadd.f32 %v1057_v4, %v957_v6 }
 0x105   : > { %v1061_v10 = vpop.f32.mrf.mxu0 }
 0x106   : > { %v1080_v15 = vadd.f32 %v1061_v10, %v958_v7 }
 0x107   : > { %v1063_v17 = vpop.f32.mrf.mxu0 }
 0x108   : > { %1096 = vrot.lane.b32.xlu0 %v1079_v14, %s3536_s21  ;;  %1098 = vrot.lane.b32.xlu1 %v1080_v15, %s3536_s21  ;;  %v1081_v27 = vadd.f32 %v1063_v17, %v959_v16 }
 0x109   : > { %v1067_v24 = vpop.f32.mrf.mxu0 }
 0x10a   : > { %v1082_v28 = vadd.f32 %v1067_v24, %v960_v20 }
 0x10b   : > { %v1069_v29 = vpop.f32.mrf.mxu0 }
 0x10c   : > { %1100 = vrot.lane.b32.xlu1 %v1081_v27, %s3536_s21  ;;  %1102 = vrot.lane.b32.xlu0 %v1082_v28, %s3536_s21  ;;  %v1083_v37 = vadd.f32 %v1069_v29, %v961_v30 }
 0x10d   : > { %v1073_v34 = vpop.f32.mrf.mxu0 }
 0x10e   : > { %v1084_v38 = vadd.f32 %v1073_v34, %v962_v32 }
 0x10f   : > { %v1075_v39 = vpop.f32.mrf.mxu0 }
 0x110   : > { %1104 = vrot.lane.b32.xlu1 %v1083_v37, %s3536_s21  ;;  %1106 = vrot.lane.b32.xlu0 %v1084_v38, %s3536_s21  ;;  %v1085_v35 = vadd.f32 %v1075_v39, %v963_v40 }
 0x114   : > { %1108 = vrot.lane.b32.xlu1 %v1085_v35, %s3536_s21 }
 0x176   : > { %v1095_v36 = vpop.permute.xlu0 %1094 }
 0x17a   : > { %v1097_v42 = vpop.permute.xlu0 %1096  ;;  %v1099_v43 = vpop.permute.xlu1 %1098 }
 0x17b   : > { %v1111_v45 = vsel %vm1110_vm5, %v1095_v36, %v1097_v42  ;;  %v1124_v46 = vmax.f32 %v1079_v14, %v1097_v42  ;;  %v1197_v42 = vld [vmem:[%s4870_s3] sm:$0xff] }
 0x17c   : > { %v1123_v47 = vmax.f32 %v3944_v2, %v1111_v45  ;;  %3244 = vmatprep.mubr.msk.f32.mxu0 %vm1321_vm7, %v1197_v42  ;;  %v1427_v45 = vld [vmem:[%s4872_s5 + $0xa0] sm:$0xf] }
 0x17d   : > { %v1142_v56 = vrot.slane %v1124_v46, 1 }
 0x17e   : > { %v1101_v48 = vpop.permute.xlu1 %1100  ;;  %v1103_v55 = vpop.permute.xlu0 %1102  ;;  %v1139_v58 = vrot.slane %v1123_v47, 1 }
 0x17f   : > { %v1112_v52 = vsel %vm1110_vm5, %v1099_v43, %v1101_v48  ;;  %v1126_v53 = vmax.f32 %v1081_v27, %v1101_v48  ;;  %v1428_v43 = vld [vmem:[%s4872_s5 + $0xa8] sm:$0xf] }
 0x180   : > { %v1125_v54 = vmax.f32 %v1080_v15, %v1112_v52  ;;  %3005 = vmatprep.subr.msk.mxu1 %vm973_vm4, %v1428_v43  ;;  %v1424_v48 = vld [vmem:[%s4872_s5 + $0x88] sm:$0xff]  ;;  %v1422_v52 = vld [vmem:[%s4872_s5 + $0x78] sm:$0xff] }
 0x181   : > { %v1143_v57 = vrot.slane %v1126_v53, 1 }
 0x182   : > { %v1140_v59 = vrot.slane %v1125_v54, 1  ;;  %v1105_v60 = vpop.permute.xlu1 %1104  ;;  %v1107_v8 = vpop.permute.xlu0 %1106 }
 0x183   : > { %v1144_v63 = vsel %vm517_vm0, %v1142_v56, %v1143_v57  ;;  %v1113_v0 = vsel %vm1110_vm5, %v1103_v55, %v1105_v60  ;;  %v1128_v1 = vmax.f32 %v1083_v37, %v1105_v60  ;;  %v1419_v55 = vld [vmem:[%s4872_s5 + $0x60] sm:$0xff]  ;;  %v1418_v56 = vld [vmem:[%s4872_s5 + $0x58] sm:$0xff] }
 0x184   : > { %v1141_v2 = vsel %vm517_vm0, %v1139_v58, %v1140_v59  ;;  %v1162_v3 = vmax.f32 %v1124_v46, %v1144_v63  ;;  %v1127_v4 = vmax.f32 %v1082_v28, %v1113_v0  ;;  %v1426_v46 = vld [vmem:[%s4872_s5 + $0x98] sm:$0xff]  ;;  %v1416_v58 = vld [vmem:[%s4872_s5 + $0x48] sm:$0xff]  ;;  %v1411_v63 = vld [vmem:[%s4872_s5 + $0x20] sm:$0xff] }
 0x185   : > { %v1161_v5 = vmax.f32 %v1123_v47, %v1141_v2  ;;  %v1147_v6 = vrot.slane %v1128_v1, 1  ;;  %v1425_v47 = vld [vmem:[%s4872_s5 + $0x90] sm:$0xff]  ;;  %v1414_v60 = vld [vmem:[%s4872_s5 + $0x38] sm:$0xff] }
 0x186   : > { %v1145_v7 = vrot.slane %v1127_v4, 1  ;;  %v1109_v9 = vpop.permute.xlu1 %1108  ;;  %v1182_v10 = vadd.f32 %v1178_v61, %v1162_v3  ;;  %v1410_v0 = vld [vmem:[%s4872_s5 + $0x18] sm:$0xff] }
 0x187   : > { %v1181_v11 = vadd.f32 %v1174_v62, %v1161_v5  ;;  %v1148_v12 = vsel %vm517_vm0, %v1143_v57, %v1147_v6  ;;  %v1114_v13 = vsel %vm1110_vm5, %v1107_v8, %v1109_v9  ;;  %v1130_v14 = vmax.f32 %v1085_v35, %v1109_v9  ;;  %v1417_v57 = vld [vmem:[%s4872_s5 + $0x50] sm:$0xff] }
 0x188   : > { %v1164_v15 = vmax.f32 %v1126_v53, %v1148_v12  ;;  %v1129_v16 = vmax.f32 %v1084_v38, %v1114_v13  ;;  %v1190_v17 = vmax.f32 %v1182_v10, 0.0  ;;  %v1146_v18 = vsel %vm517_vm0, %v1140_v59, %v1145_v7  ;;  %v1421_v53 = vld [vmem:[%s4872_s5 + $0x70] sm:$0xff]  ;;  %v1415_v59 = vld [vmem:[%s4872_s5 + $0x40] sm:$0xff]  ;;  %v1198_v10 = vld [vmem:[%s4870_s3 + $0x8] sm:$0x3f] }
 0x189   : > { %v1151_v19 = vrot.slane %v1130_v14, 1  ;;  %v1189_v20 = vmax.f32 %v1181_v11, 0.0  ;;  %v1163_v21 = vmax.f32 %v1125_v54, %v1146_v18  ;;  %v1420_v54 = vld [vmem:[%s4872_s5 + $0x68] sm:$0xff]  ;;  %v3000_v11 = vld [vmem:[%s4872_s5 + $0x158] sm:$0xf]  ;;  %v2993_v18 = vld [vmem:[%s4872_s5 + $0x120] sm:$0xff] }
 0x18a   : > { %v1149_v23 = vrot.slane %v1129_v16, 1  ;;  %2972 = vmatprep.mubr.msk.f32.mxu1 %vm1220_vm6, %v1190_v17  ;;  %v1184_v24 = vadd.f32 %v1178_v61, %v1164_v15  ;;  %v2999_v12 = vld [vmem:[%s4872_s5 + $0x150] sm:$0xf]  ;;  %v2998_v13 = vld [vmem:[%s4872_s5 + $0x148] sm:$0xff]  ;;  %v2996_v15 = vld [vmem:[%s4872_s5 + $0x138] sm:$0xff] }
 0x18b   : > { %v1152_v25 = vsel %vm517_vm0, %v1147_v6, %v1151_v19  ;;  %v1168_v26 = vmax.f32 %v1130_v14, %v1151_v19  ;;  %1301 = vmatmul.mubr.f32.vlgmr.msra.gmra.mxu1 %v1189_v20  ;;  %v1183_v27 = vadd.f32 %v1174_v62, %v1163_v21  ;;  %v2997_v14 = vld [vmem:[%s4872_s5 + $0x140] sm:$0xff]  ;;  %v2994_v17 = vld [vmem:[%s4872_s5 + $0x128] sm:$0xff]  ;;  %v2992_v19 = vld [vmem:[%s4872_s5 + $0x118] sm:$0xff] }
 0x18c   : > { %v1166_v28 = vmax.f32 %v1128_v1, %v1152_v25  ;;  %v1192_v29 = vmax.f32 %v1184_v24, 0.0  ;;  %v1150_v30 = vsel %vm517_vm0, %v1145_v7, %v1149_v23  ;;  %v1167_v31 = vmax.f32 %v1129_v16, %v1149_v23  ;;  %3006 = vmatpush1.msk.msra.mxu1 %vm973_vm4, %v1427_v45  ;;  %v1409_v1 = vld [vmem:[%s4872_s5 + $0x10] sm:$0xff]  ;;  %v2990_v21 = vld [vmem:[%s4872_s5 + $0x108] sm:$0xff]  ;;  %v2989_v23 = vld [vmem:[%s4872_s5 + $0x100] sm:$0xff] }
 0x18d   : > { %v1191_v32 = vmax.f32 %v1183_v27, 0.0  ;;  %v1165_v33 = vmax.f32 %v1127_v4, %v1150_v30  ;;  %v1188_v34 = vadd.f32 %v1178_v61, %v1168_v26  ;;  %1567 = vmatprep.subr.mxu1 %v1426_v46  ;;  %v2995_v16 = vld [vmem:[%s4872_s5 + $0x130] sm:$0xff]  ;;  %v2988_v24 = vld [vmem:[%s4872_s5 + $0xf8] sm:$0xff]  ;;  %v2986_v26 = vld [vmem:[%s4872_s5 + $0xe8] sm:$0xff] }
 0x18e   : > { %2973 = vmatprep.mubr.msk.f32.mxu1 %vm1220_vm6, %v1192_v29  ;;  %v1186_v37 = vadd.f32 %v1178_v61, %v1166_v28  ;;  %v1187_v35 = vadd.f32 %v1174_v62, %v1167_v31  ;;  %1568 = vmatpush1.msra.mxu1 %v1425_v47  ;;  %v1413_v61 = vld [vmem:[%s4872_s5 + $0x30] sm:$0xff]  ;;  %v2985_v27 = vld [vmem:[%s4872_s5 + $0xe0] sm:$0xff]  ;;  %v2984_v28 = vld [vmem:[%s4872_s5 + $0xd8] sm:$0xff] }
 0x18f   : > { %1306 = vmatmul.mubr.f32.gmra.mxu1 %v1191_v32  ;;  %v1185_v38 = vadd.f32 %v1174_v62, %v1165_v33  ;;  %v1196_v36 = vmax.f32 %v1188_v34, 0.0  ;;  %1569 = vmatprep.subr.mxu1 %v1424_v48  ;;  %v1412_v62 = vld [vmem:[%s4872_s5 + $0x28] sm:$0xff]  ;;  %v2991_v20 = vld [vmem:[%s4872_s5 + $0x110] sm:$0xff]  ;;  %v1407_v32 = vld [vmem:[%s4872_s5] sm:$0xff] }
 0x190   : > { %v1194_v39 = vmax.f32 %v1186_v37, 0.0  ;;  %v1195_v41 = vmax.f32 %v1187_v35, 0.0  ;;  %1570 = vmatpush1.msra.mxu1 %v1423_v50  ;;  %v2987_v25 = vld [vmem:[%s4872_s5 + $0xf0] sm:$0xff]  ;;  %v1408_v30 = vld [vmem:[%s4872_s5 + $0x8] sm:$0xff]  ;;  %v2981_v33 = vld [vmem:[%s4872_s5 + $0xc0] sm:$0xff] }
 0x191   : > { %v1193_v40 = vmax.f32 %v1185_v38, 0.0  ;;  %1571 = vmatprep.subr.mxu1 %v1422_v52  ;;  %v2983_v29 = vld [vmem:[%s4872_s5 + $0xd0] sm:$0xff]  ;;  %v2982_v31 = vld [vmem:[%s4872_s5 + $0xc8] sm:$0xff]  ;;  %v3056_v34 = vld [vmem:[%s4872_s5 + $0x2b8] sm:$0xf] }
 0x192   : > { %2974 = vmatprep.mubr.msk.f32.mxu1 %vm1220_vm6, %v1194_v39  ;;  %1572 = vmatpush1.msra.mxu1 %v1421_v53  ;;  %v2980_v37 = vld [vmem:[%s4872_s5 + $0xb8] sm:$0xff]  ;;  %v2979_v38 = vld [vmem:[%s4872_s5 + $0xb0] sm:$0xff]  ;;  %v3030_v39 = vld [vmem:[%s4872_s5 + $0x208] sm:$0xf] }
 0x193   : > { %1311 = vmatmul.mubr.f32.gmra.mxu1 %v1193_v40  ;;  %1573 = vmatprep.subr.mxu1 %v1420_v54  ;;  %v3055_v35 = vld [vmem:[%s4872_s5 + $0x2b0] sm:$0xf]  ;;  %v3053_v45 = vld [vmem:[%s4872_s5 + $0x2a0] sm:$0xff]  ;;  %v3052_v47 = vld [vmem:[%s4872_s5 + $0x298] sm:$0xff] }
 0x194   : > { %2975 = vmatprep.mubr.msk.f32.mxu1 %vm1220_vm6, %v1196_v36  ;;  %1574 = vmatpush1.msra.mxu1 %v1419_v55  ;;  %v3029_v46 = vld [vmem:[%s4872_s5 + $0x200] sm:$0xf]  ;;  %v3028_v50 = vld [vmem:[%s4872_s5 + $0x1f8] sm:$0xff]  ;;  %v3051_v52 = vld [vmem:[%s4872_s5 + $0x290] sm:$0xff] }
 0x195   : > { %1575 = vmatprep.subr.mxu1 %v1418_v56  ;;  %v3027_v53 = vld [vmem:[%s4872_s5 + $0x1f0] sm:$0xff]  ;;  %v3050_v54 = vld [vmem:[%s4872_s5 + $0x288] sm:$0xff]  ;;  %v3049_v56 = vld [vmem:[%s4872_s5 + $0x280] sm:$0xff] }
 0x196   : > { %1576 = vmatpush1.msra.mxu1 %v1417_v57  ;;  %v3026_v55 = vld [vmem:[%s4872_s5 + $0x1e8] sm:$0xff]  ;;  %v3048_v57 = vld [vmem:[%s4872_s5 + $0x278] sm:$0xff] }
 0x197   : > { %1316 = vmatmul.mubr.f32.gmra.mxu1 %v1195_v41  ;;  %1577 = vmatprep.subr.mxu1 %v1416_v58  ;;  %v3054_v41 = vld [vmem:[%s4872_s5 + $0x2a8] sm:$0xff]  ;;  %v3025_v58 = vld [vmem:[%s4872_s5 + $0x1e0] sm:$0xff] }
 0x198   : > { %1619 = vmatprep.mubr.f32.mxu1 %v3535_v22  ;;  %1578 = vmatpush1.msra.mxu1 %v1415_v59  ;;  %v3047_v59 = vld [vmem:[%s4872_s5 + $0x270] sm:$0xff] }
 0x199   : > { %1579 = vmatprep.subr.mxu1 %v1414_v60  ;;  %v3024_v60 = vld [vmem:[%s4872_s5 + $0x1d8] sm:$0xff] }
 0x19a   : > { %1580 = vmatpush1.msra.mxu1 %v1413_v61  ;;  %v3046_v61 = vld [vmem:[%s4872_s5 + $0x268] sm:$0xff] }
 0x19b   : > { %1581 = vmatprep.subr.mxu1 %v1412_v62  ;;  %v3023_v62 = vld [vmem:[%s4872_s5 + $0x1d0] sm:$0xff] }
 0x19c   : > { %1582 = vmatpush1.msra.mxu1 %v1411_v63  ;;  %v3045_v63 = vld [vmem:[%s4872_s5 + $0x260] sm:$0xff] }
 0x19d   : > { %1583 = vmatprep.subr.mxu1 %v1410_v0  ;;  %v3022_v0 = vld [vmem:[%s4872_s5 + $0x1c8] sm:$0xff] }
 0x19e   : > { %1584 = vmatpush1.msra.mxu1 %v1409_v1  ;;  %v3044_v1 = vld [vmem:[%s4872_s5 + $0x258] sm:$0xff] }
 0x19f   : > { %1585 = vmatprep.subr.mxu1 %v1408_v30  ;;  %v3082_v30 = vld [vmem:[%s4872_s5 + $0x368] sm:$0xf] }
 0x1a0   : > { %1586 = vmatpush1.msra.mxu1 %v1407_v32 }
 0x1a1   : > { %3057 = vmatprep.subr.msk.mxu1 %vm973_vm4, %v3056_v34  ;;  %v3079_v34 = vld [vmem:[%s4872_s5 + $0x350] sm:$0xff] }
 0x24b   : > { %v1302_v2 = vpop.f32.mrf.mxu1 }
 0x24d   : > { %v1304_v3 = vpop.f32.mrf.mxu1 }
 0x24e   : > { %v3043_v3 = vld [vmem:[%s4872_s5 + $0x250] sm:$0xff] }
 0x24f   : > { %v1307_v4 = vpop.f32.mrf.mxu1 }
 0x251   : > { %v1309_v5 = vpop.f32.mrf.mxu1 }
 0x252   : > { %v3042_v5 = vld [vmem:[%s4872_s5 + $0x248] sm:$0xff] }
 0x253   : > { %v1312_v6 = vpop.f32.mrf.mxu1 }
 0x255   : > { %v1314_v7 = vpop.f32.mrf.mxu1 }
 0x256   : > { %v3041_v7 = vld [vmem:[%s4872_s5 + $0x240] sm:$0xff] }
 0x257   : > { %v1317_v8 = vpop.f32.mrf.mxu1 }
 0x258   : > { %3236 = vmatprep.subr.msk.mxu0 %vm1328_vm8, %v1317_v8 }
 0x259   : > { %v1319_v9 = vpop.f32.mrf.mxu1  ;;  %3237 = vmatpush3.msk.msra.mxu0 %vm1328_vm8, %v1317_v8  ;;  %v3018_v8 = vld [vmem:[%s4872_s5 + $0x1a8] sm:$0xff] }
 0x25a   : > { %3238 = vmatprep.subr.mxu0 %v1312_v6  ;;  %v3040_v9 = vld [vmem:[%s4872_s5 + $0x238] sm:$0xff] }
 0x25b   : > { %3239 = vmatpush3.msra.mxu0 %v1312_v6  ;;  %v3019_v6 = vld [vmem:[%s4872_s5 + $0x1b0] sm:$0xff] }
 0x25c   : > { %3240 = vmatprep.subr.mxu0 %v1307_v4 }
 0x25d   : > { %3241 = vmatpush3.msra.mxu0 %v1307_v4  ;;  %v3020_v4 = vld [vmem:[%s4872_s5 + $0x1b8] sm:$0xff] }
 0x25e   : > { %3242 = vmatprep.subr.mxu0 %v1302_v2 }
 0x25f   : > { %3243 = vmatpush3.msra.mxu0 %v1302_v2  ;;  %v3021_v2 = vld [vmem:[%s4872_s5 + $0x1c0] sm:$0xff] }
 0x260   : > { %3245 = vmatmul.mubr.msk.f32.vlgmr.msra.gmra.mxu0 %vm1321_vm7, %v1198_v10  ;;  %3001 = vmatprep.subr.msk.mxu0 %vm973_vm4, %v3000_v11  ;;  %v3017_v10 = vld [vmem:[%s4872_s5 + $0x1a0] sm:$0xff]  ;;  %v3039_v11 = vld [vmem:[%s4872_s5 + $0x230] sm:$0xff] }
 0x261   : > { %3002 = vmatpush1.msk.msra.mxu0 %vm973_vm4, %v2999_v12  ;;  %1532 = vmatprep.mubr.f32.mxu0 %v3535_v22  ;;  %v3016_v12 = vld [vmem:[%s4872_s5 + $0x198] sm:$0xff] }
 0x262   : > { %1480 = vmatprep.subr.mxu0 %v2998_v13  ;;  %v3038_v13 = vld [vmem:[%s4872_s5 + $0x228] sm:$0xff] }
 0x263   : > { %1481 = vmatpush1.msra.mxu0 %v2997_v14  ;;  %v3015_v14 = vld [vmem:[%s4872_s5 + $0x190] sm:$0xff] }
 0x264   : > { %1482 = vmatprep.subr.mxu0 %v2996_v15  ;;  %v3037_v15 = vld [vmem:[%s4872_s5 + $0x220] sm:$0xff] }
 0x265   : > { %1483 = vmatpush1.msra.mxu0 %v2995_v16  ;;  %v3014_v16 = vld [vmem:[%s4872_s5 + $0x188] sm:$0xff] }
 0x266   : > { %1484 = vmatprep.subr.mxu0 %v2994_v17  ;;  %v3036_v17 = vld [vmem:[%s4872_s5 + $0x218] sm:$0xff] }
 0x267   : > { %1485 = vmatpush1.msra.mxu0 %v2993_v18 }
 0x268   : > { %1486 = vmatprep.subr.mxu0 %v2992_v19  ;;  %v3013_v19 = vld [vmem:[%s4872_s5 + $0x180] sm:$0xff] }
 0x269   : > { %1487 = vmatpush1.msra.mxu0 %v2991_v20  ;;  %v3035_v20 = vld [vmem:[%s4872_s5 + $0x210] sm:$0xff] }
 0x26a   : > { %1488 = vmatprep.subr.mxu0 %v2990_v21  ;;  %v3012_v21 = vld [vmem:[%s4872_s5 + $0x178] sm:$0xff] }
 0x26b   : > { %1489 = vmatpush1.msra.mxu0 %v2989_v23 }
 0x26c   : > { %1490 = vmatprep.subr.mxu0 %v2988_v24  ;;  %v3011_v24 = vld [vmem:[%s4872_s5 + $0x170] sm:$0xff] }
 0x26d   : > { %1491 = vmatpush1.msra.mxu0 %v2987_v25 }
 0x26e   : > { %1492 = vmatprep.subr.mxu0 %v2986_v26  ;;  %v3010_v26 = vld [vmem:[%s4872_s5 + $0x168] sm:$0xff] }
 0x26f   : > { %1493 = vmatpush1.msra.mxu0 %v2985_v27 }
 0x270   : > { %1494 = vmatprep.subr.mxu0 %v2984_v28  ;;  %v3009_v28 = vld [vmem:[%s4872_s5 + $0x160] sm:$0xff] }
 0x271   : > { %1495 = vmatpush1.msra.mxu0 %v2983_v29 }
 0x272   : > { %1496 = vmatprep.subr.mxu0 %v2982_v31  ;;  %v3081_v31 = vld [vmem:[%s4872_s5 + $0x360] sm:$0xf] }
 0x273   : > { %1497 = vmatpush1.msra.mxu0 %v2981_v33  ;;  %v3080_v33 = vld [vmem:[%s4872_s5 + $0x358] sm:$0xff] }
 0x274   : > { %1498 = vmatprep.subr.mxu0 %v2980_v37  ;;  %v3078_v37 = vld [vmem:[%s4872_s5 + $0x348] sm:$0xff] }
 0x275   : > { %1499 = vmatpush1.msra.mxu0 %v2979_v38  ;;  %v3077_v38 = vld [vmem:[%s4872_s5 + $0x340] sm:$0xff] }
 0x276   : > { %3031 = vmatprep.subr.msk.mxu0 %vm973_vm4, %v3030_v39  ;;  %v3076_v39 = vld [vmem:[%s4872_s5 + $0x338] sm:$0xff] }
 0x320   : > { %v4154_v40 = vpop.f32.mrf.mxu0 }
 0x321   : > { %v1455_v42 = vrot.slane %v4154_v40, 1  ;;  %v1773_v23 = vrot.slane %v4154_v40, 3  ;;  %v1656_v29 = vrot.slane %v4154_v40, 2 }
 0x322   : > { %v4159_v36 = vpop.f32.mrf.mxu0 }
 0x323   : > { %v1454_v43 = vrot.slane %v4159_v36, 1  ;;  %3007 = vmatmul.mubr.msk.f32.vlgmr.msra.gmra.mxu1 %vm1457_vm9, %v4159_v36  ;;  %v1772_v18 = vrot.slane %v4159_v36, 3  ;;  %v1655_v25 = vrot.slane %v4159_v36, 2 }
 0x324   : > { %3058 = vmatpush1.msk.msra.mxu1 %vm973_vm4, %v3055_v35  ;;  %1625 = vmatprep.mubr.f32.mxu1 %v3535_v22  ;;  %v3075_v35 = vld [vmem:[%s4872_s5 + $0x330] sm:$0xff] }
 0x325   : > { %1797 = vmatprep.subr.mxu1 %v3054_v41  ;;  %v1456_v48 = vsel %vm517_vm0, %v1454_v43, %v1455_v42  ;;  %v1774_v27 = vsel %vm851_vm3, %v1772_v18, %v1773_v23  ;;  %v1657_v32 = vsel %vm729_vm2, %v1655_v25, %v1656_v29  ;;  %v3074_v41 = vld [vmem:[%s4872_s5 + $0x328] sm:$0xff]  ;;  %v3072_v43 = vld [vmem:[%s4872_s5 + $0x318] sm:$0xff] }
 0x326   : > { %1798 = vmatpush1.msra.mxu1 %v3053_v45  ;;  %3003 = vmatmul.mubr.msk.f32.vlgmr.msra.gmra.mxu0 %vm1457_vm9, %v1456_v48  ;;  %v3071_v45 = vld [vmem:[%s4872_s5 + $0x310] sm:$0xff]  ;;  %v3068_v48 = vld [vmem:[%s4872_s5 + $0x2f8] sm:$0xff] }
 0x327   : > { %3032 = vmatpush1.msk.msra.mxu0 %vm973_vm4, %v3029_v46  ;;  %1799 = vmatprep.subr.mxu1 %v3052_v47  ;;  %v3070_v46 = vld [vmem:[%s4872_s5 + $0x308] sm:$0xff]  ;;  %v3069_v47 = vld [vmem:[%s4872_s5 + $0x300] sm:$0xff]  ;;  %v2047_v18 = vld [vmem:[%s4875_s8 + $0x18] sm:$0xff] }
 0x328   : > { %3008 = vmatmul.mubr.msk.f32.gmra.mxu1 %vm1457_vm9, %v4154_v40  ;;  %1680 = vmatprep.subr.mxu0 %v3028_v50  ;;  %v3067_v50 = vld [vmem:[%s4872_s5 + $0x2f0] sm:$0xff] }
 0x329   : > { %1800 = vmatpush1.msra.mxu1 %v3051_v52  ;;  %1681 = vmatpush1.msra.mxu0 %v3027_v53  ;;  %v3066_v52 = vld [vmem:[%s4872_s5 + $0x2e8] sm:$0xff]  ;;  %v3065_v53 = vld [vmem:[%s4872_s5 + $0x2e0] sm:$0xff] }
 0x32a   : > { %1801 = vmatprep.subr.mxu1 %v3050_v54  ;;  %1538 = vmatprep.mubr.f32.mxu0 %v3535_v22  ;;  %v3064_v54 = vld [vmem:[%s4872_s5 + $0x2d8] sm:$0xff] }
 0x32b   : > { %1682 = vmatprep.subr.mxu0 %v3026_v55  ;;  %1802 = vmatpush1.msra.mxu1 %v3049_v56  ;;  %v3063_v55 = vld [vmem:[%s4872_s5 + $0x2d0] sm:$0xff]  ;;  %v1889_v56 = vrot.slane %v4159_v36, 4  ;;  %v2059_v36 = vld [vmem:[%s4875_s8 + $0x78] sm:$0xff] }
 0x32c   : > { %3004 = vmatmul.mubr.msk.f32.gmra.mxu0 %vm1457_vm9, %v1455_v42  ;;  %1803 = vmatprep.subr.mxu1 %v3048_v57  ;;  %v3073_v42 = vld [vmem:[%s4872_s5 + $0x320] sm:$0xff]  ;;  %v3062_v57 = vld [vmem:[%s4872_s5 + $0x2c8] sm:$0xff] }
 0x32d   : > { %1683 = vmatpush1.msra.mxu0 %v3025_v58  ;;  %1804 = vmatpush1.msra.mxu1 %v3047_v59  ;;  %v3061_v58 = vld [vmem:[%s4872_s5 + $0x2c0] sm:$0xff]  ;;  %v1890_v59 = vrot.slane %v4154_v40, 4  ;;  %v2058_v40 = vld [vmem:[%s4875_s8 + $0x70] sm:$0xff] }
 0x32e   : > { %1684 = vmatprep.subr.mxu0 %v3024_v60  ;;  %1805 = vmatprep.subr.mxu1 %v3046_v61  ;;  %v2057_v61 = vld [vmem:[%s4875_s8 + $0x68] sm:$0xff] }
 0x32f   : > { %1685 = vmatpush1.msra.mxu0 %v3023_v62  ;;  %1806 = vmatpush1.msra.mxu1 %v3045_v63  ;;  %v1891_v60 = vsel %vm973_vm4, %v1889_v56, %v1890_v59  ;;  %v2056_v62 = vld [vmem:[%s4875_s8 + $0x60] sm:$0xff]  ;;  %v2055_v63 = vld [vmem:[%s4875_s8 + $0x58] sm:$0xff] }
 0x330   : > { %1686 = vmatprep.subr.mxu0 %v3022_v0  ;;  %1807 = vmatprep.subr.mxu1 %v3044_v1  ;;  %v2054_v0 = vld [vmem:[%s4875_s8 + $0x50] sm:$0xff]  ;;  %v2053_v1 = vld [vmem:[%s4875_s8 + $0x48] sm:$0xff] }
 0x331   : > { %1687 = vmatpush1.msra.mxu0 %v3021_v2  ;;  %1808 = vmatpush1.msra.mxu1 %v3043_v3  ;;  %v2052_v2 = vld [vmem:[%s4875_s8 + $0x40] sm:$0xff]  ;;  %v2051_v3 = vld [vmem:[%s4875_s8 + $0x38] sm:$0xff] }
 0x332   : > { %1688 = vmatprep.subr.mxu0 %v3020_v4  ;;  %1809 = vmatprep.subr.mxu1 %v3042_v5  ;;  %v2050_v4 = vld [vmem:[%s4875_s8 + $0x30] sm:$0xff]  ;;  %v2049_v5 = vld [vmem:[%s4875_s8 + $0x28] sm:$0xff] }
 0x333   : > { %1689 = vmatpush1.msra.mxu0 %v3019_v6  ;;  %1810 = vmatpush1.msra.mxu1 %v3041_v7 }
 0x334   : > { %1690 = vmatprep.subr.mxu0 %v3018_v8  ;;  %1811 = vmatprep.subr.mxu1 %v3040_v9 }
 0x335   : > { %1691 = vmatpush1.msra.mxu0 %v3017_v10  ;;  %1812 = vmatpush1.msra.mxu1 %v3039_v11 }
 0x336   : > { %1692 = vmatprep.subr.mxu0 %v3016_v12  ;;  %1813 = vmatprep.subr.mxu1 %v3038_v13 }
 0x337   : > { %1693 = vmatpush1.msra.mxu0 %v3015_v14  ;;  %1814 = vmatpush1.msra.mxu1 %v3037_v15  ;;  %v2048_v14 = vld [vmem:[%s4875_s8 + $0x20] sm:$0xff] }
 0x338   : > { %1694 = vmatprep.subr.mxu0 %v3014_v16  ;;  %1815 = vmatprep.subr.mxu1 %v3036_v17 }
 0x339   : > { %1695 = vmatpush1.msra.mxu0 %v3013_v19  ;;  %1816 = vmatpush1.msra.mxu1 %v3035_v20 }
 0x33a   : > { %1696 = vmatprep.subr.mxu0 %v3012_v21  ;;  %1849 = vmatprep.mubr.f32.mxu1 %v3535_v22  ;;  %v2046_v21 = vld [vmem:[%s4875_s8 + $0x10] sm:$0xff] }
 0x33b   : > { %1697 = vmatpush1.msra.mxu0 %v3011_v24  ;;  %3059 = vmatmul.mubr.msk.f32.vlgmr.msra.gmra.mxu1 %vm1457_vm9, %v1774_v27 }
 0x33c   : > { %1698 = vmatprep.subr.mxu0 %v3010_v26  ;;  %1732 = vmatprep.mubr.f32.mxu0 %v3535_v22  ;;  %v2045_v26 = vld [vmem:[%s4875_s8 + $0x8] sm:$0xff] }
 0x33d   : > { %1699 = vmatpush1.msra.mxu0 %v3009_v28  ;;  %1855 = vmatprep.mubr.f32.mxu1 %v3535_v22 }
 0x33e   : > { %3033 = vmatmul.mubr.msk.f32.vlgmr.msra.gmra.mxu0 %vm1457_vm9, %v1657_v32  ;;  %3083 = vmatprep.subr.msk.mxu0 %vm973_vm4, %v3082_v30  ;;  %v2044_v30 = vld [vmem:[%s4875_s8] sm:$0xff] }
 0x33f   : > { %3060 = vmatmul.mubr.msk.f32.gmra.mxu1 %vm1457_vm9, %v1773_v23  ;;  %3084 = vmatpush1.msk.msra.mxu0 %vm973_vm4, %v3081_v31 }
 0x340   : > { %1914 = vmatprep.subr.mxu0 %v3080_v33  ;;  %1738 = vmatprep.mubr.f32.mxu0 %v3535_v22 }
 0x341   : > { %1915 = vmatpush1.msra.mxu0 %v3079_v34  ;;  %2074 = vmatprep.subr.mxu1 %v3535_v22 }
 0x342   : > { %3034 = vmatmul.mubr.msk.f32.gmra.mxu0 %vm1457_vm9, %v1656_v29  ;;  %1916 = vmatprep.subr.mxu0 %v3078_v37 }
 0x343   : > { %1917 = vmatpush1.msra.mxu0 %v3077_v38  ;;  %1966 = vmatprep.mubr.f32.mxu0 %v3535_v22  ;;  %v2063_v38 = vld [vmem:[%s4875_s8 + $0x98] sm:$0x7f] }
 0x344   : > { %1918 = vmatprep.subr.mxu0 %v3076_v39  ;;  %2075 = vmatpush1.msra.mxu1 %v2059_v36 }
 0x345   : > { %1919 = vmatpush1.msra.mxu0 %v3075_v35  ;;  %2076 = vmatprep.subr.mxu1 %v3535_v22 }
 0x346   : > { %1920 = vmatprep.subr.mxu0 %v3074_v41  ;;  %2077 = vmatpush1.msra.mxu1 %v2058_v40 }
 0x347   : > { %1921 = vmatpush1.msra.mxu0 %v3073_v42  ;;  %2078 = vmatprep.subr.mxu1 %v3535_v22 }
 0x348   : > { %1922 = vmatprep.subr.mxu0 %v3072_v43  ;;  %2079 = vmatpush1.msra.mxu1 %v2057_v61  ;;  %v2062_v43 = vld [vmem:[%s4875_s8 + $0x90] sm:$0xff] }
 0x349   : > { %1923 = vmatpush1.msra.mxu0 %v3071_v45  ;;  %2080 = vmatprep.subr.mxu1 %v3535_v22 }
 0x34a   : > { %1924 = vmatprep.subr.mxu0 %v3070_v46  ;;  %2081 = vmatpush1.msra.mxu1 %v2056_v62  ;;  %v2023_v62 = vld [vmem:[%s4873_s6] sm:$0x3] }
 0x34b   : > { %1925 = vmatpush1.msra.mxu0 %v3069_v47  ;;  %2082 = vmatprep.subr.mxu1 %v3535_v22 }
 0x34c   : > { %1926 = vmatprep.subr.mxu0 %v3068_v48  ;;  %2083 = vmatpush1.msra.mxu1 %v2055_v63 }
 0x34d   : > { %1927 = vmatpush1.msra.mxu0 %v3067_v50  ;;  %2084 = vmatprep.subr.mxu1 %v3535_v22  ;;  %v2061_v50 = vld [vmem:[%s4875_s8 + $0x88] sm:$0xff] }
 0x34e   : > { %1928 = vmatprep.subr.mxu0 %v3066_v52  ;;  %2085 = vmatpush1.msra.mxu1 %v2054_v0  ;;  %v2060_v52 = vld [vmem:[%s4875_s8 + $0x80] sm:$0xff] }
 0x34f   : > { %1929 = vmatpush1.msra.mxu0 %v3065_v53  ;;  %2086 = vmatprep.subr.mxu1 %v3535_v22 }
 0x350   : > { %1930 = vmatprep.subr.mxu0 %v3064_v54  ;;  %2087 = vmatpush1.msra.mxu1 %v2053_v1 }
 0x351   : > { %1931 = vmatpush1.msra.mxu0 %v3063_v55  ;;  %2088 = vmatprep.subr.mxu1 %v3535_v22 }
 0x352   : > { %1932 = vmatprep.subr.mxu0 %v3062_v57  ;;  %2089 = vmatpush1.msra.mxu1 %v2052_v2 }
 0x353   : > { %1933 = vmatpush1.msra.mxu0 %v3061_v58  ;;  %2090 = vmatprep.subr.mxu1 %v3535_v22 }
 0x354   : > { %3085 = vmatmul.mubr.msk.f32.vlgmr.msra.gmra.mxu0 %vm1457_vm9, %v1891_v60  ;;  %3247 = vmatprep.subr.mxu0 %v3535_v22 }
 0x355   : > { %1972 = vmatprep.mubr.f32.mxu0 %v3535_v22  ;;  %2091 = vmatpush1.msra.mxu1 %v2051_v3 }
 0x356   : > { %2092 = vmatprep.subr.mxu1 %v3535_v22 }
 0x357   : > { %2093 = vmatpush1.msra.mxu1 %v2050_v4 }
 0x358   : > { %3086 = vmatmul.mubr.msk.f32.gmra.mxu0 %vm1457_vm9, %v1890_v59  ;;  %2094 = vmatprep.subr.mxu1 %v3535_v22 }
 0x359   : > { %2095 = vmatpush1.msra.mxu1 %v2049_v5  ;;  %v2032_v5 = vrot.slane %v2023_v62, %v1177_v49  ;;  %3251 = vmatprep.mubr.msk.f32.mxu0 %vm3537_vm11, %v3535_v22 }
 0x35a   : > { %2096 = vmatprep.subr.mxu1 %v3535_v22 }
 0x35b   : > { %2097 = vmatpush1.msra.mxu1 %v2048_v14 }
 0x35c   : > { %2098 = vmatprep.subr.mxu1 %v3535_v22 }
 0x35d   : > { %2099 = vmatpush1.msra.mxu1 %v2047_v18 }
 0x35e   : > { %2100 = vmatprep.subr.mxu1 %v3535_v22 }
 0x35f   : > { %2101 = vmatpush1.msra.mxu1 %v2046_v21  ;;  %v3111_v21 = vld [vmem:[%s4876_s9 + $0xd8] sm:$0xff] }
 0x360   : > { %2102 = vmatprep.subr.mxu1 %v3535_v22 }
 0x361   : > { %2103 = vmatpush1.msra.mxu1 %v2045_v26  ;;  %v3107_v26 = vld [vmem:[%s4876_s9 + $0xb8] sm:$0xff] }
 0x362   : > { %2104 = vmatprep.subr.mxu1 %v3535_v22 }
 0x363   : > { %2105 = vmatpush1.msra.mxu1 %v2044_v30 }
 0x364   : > { %2130 = vmatprep.subr.mxu1 %v3535_v22 }
 0x365   : > { %3087 = vmatpush2.msk.msra.mxu1 %vm517_vm0, %v2063_v38  ;;  %v3099_v38 = vld [vmem:[%s4876_s9 + $0x88] sm:$0xff] }
 0x366   : > { %2132 = vmatprep.subr.mxu1 %v3535_v22 }
 0x367   : > { %2133 = vmatpush2.msra.mxu1 %v2062_v43  ;;  %v3094_v43 = vld [vmem:[%s4876_s9 + $0x60] sm:$0xff] }
 0x368   : > { %2134 = vmatprep.subr.mxu1 %v3535_v22 }
 0x369   : > { %2135 = vmatpush2.msra.mxu1 %v2061_v50 }
 0x36a   : > { %2136 = vmatprep.subr.mxu1 %v3535_v22 }
 0x36b   : > { %2137 = vmatpush2.msra.mxu1 %v2060_v52 }
 0x36c   : > { %3300 = vmatprep.subr.mxu1 %v3535_v22 }
 0x3e3   : > { %v1621_v8 = vpop.f32.mrf.mxu1 }
 0x3e5   : > { %v1623_v10 = vpop.f32.mrf.mxu1 }
 0x3e6   : > { %v1534_v6 = vpop.f32.mrf.mxu0 }
 0x3e7   : > { %v1622_v19 = vadd.f32 %v1621_v8, %v1534_v6 }
 0x3e8   : > { %v1536_v7 = vpop.f32.mrf.mxu0  ;;  %v1627_v12 = vpop.f32.mrf.mxu1 }
 0x3e9   : > { %v1624_v23 = vadd.f32 %v1623_v10, %v1536_v7  ;;  %v2028_v7 = vrot.slane %v2023_v62, %v1173_v51  ;;  %v3113_v51 = vld [vmem:[%s4876_s9 + $0xe8] sm:$0xff]  ;;  %v2231_v62 = vld [vmem:[%s4876_s9 + $0x20] sm:$0xff] }
 0x3ea   : > { %v1629_v15 = vpop.f32.mrf.mxu1 }
 0x3ec   : > { %v1540_v9 = vpop.f32.mrf.mxu0 }
 0x3ed   : > { %v1628_v27 = vadd.f32 %v1627_v12, %v1540_v9 }
 0x3ee   : > { %v1542_v11 = vpop.f32.mrf.mxu0 }
 0x3ef   : > { %v1630_v31 = vadd.f32 %v1629_v15, %v1542_v11 }
 0x3fb   : > { %v1851_v17 = vpop.f32.mrf.mxu1 }
 0x3fd   : > { %v1853_v25 = vpop.f32.mrf.mxu1 }
 0x3fe   : > { %v1734_v13 = vpop.f32.mrf.mxu0 }
 0x3ff   : > { %v1745_v24 = vadd.f32 %v1734_v13, %v1622_v19  ;;  %v1857_v34 = vpop.f32.mrf.mxu1 }
 0x400   : > { %v1736_v16 = vpop.f32.mrf.mxu0 }
 0x401   : > { %v1746_v28 = vadd.f32 %v1736_v16, %v1624_v23  ;;  %v1862_v33 = vadd.f32 %v1851_v17, %v1745_v24  ;;  %v1859_v47 = vpop.f32.mrf.mxu1  ;;  %v3110_v23 = vld [vmem:[%s4876_s9 + $0xd0] sm:$0xff]  ;;  %v3109_v24 = vld [vmem:[%s4876_s9 + $0xc8] sm:$0xff] }
 0x402   : > { %v1740_v20 = vpop.f32.mrf.mxu0 }
 0x403   : > { %v1747_v32 = vadd.f32 %v1740_v20, %v1628_v27  ;;  %v1863_v41 = vadd.f32 %v1853_v25, %v1746_v28  ;;  %v3112_v20 = vld [vmem:[%s4876_s9 + $0xe0] sm:$0xff]  ;;  %v3106_v27 = vld [vmem:[%s4876_s9 + $0xb0] sm:$0xff]  ;;  %v3105_v28 = vld [vmem:[%s4876_s9 + $0xa8] sm:$0xff] }
 0x404   : > { %v1742_v29 = vpop.f32.mrf.mxu0  ;;  %v3108_v25 = vld [vmem:[%s4876_s9 + $0xc0] sm:$0xff] }
 0x405   : > { %v1748_v39 = vadd.f32 %v1742_v29, %v1630_v31  ;;  %v1864_v46 = vadd.f32 %v1857_v34, %v1747_v32  ;;  %v2043_v32 = vld [vmem:[%s4874_s7] sm:$0x1f]  ;;  %v3101_v34 = vld [vmem:[%s4876_s9 + $0x98] sm:$0xff] }
 0x407   : > { %v1865_v54 = vadd.f32 %v1859_v47, %v1748_v39  ;;  %v3098_v39 = vld [vmem:[%s4876_s9 + $0x80] sm:$0xff] }
 0x408   : > { %v3104_v47 = vld [vmem:[%s4876_s9 + $0xa0] sm:$0xff] }
 0x414   : > { %v1968_v37 = vpop.f32.mrf.mxu0 }
 0x415   : > { %v1979_v35 = vadd.f32 %v1968_v37, %v1862_v33  ;;  %v3100_v37 = vld [vmem:[%s4876_s9 + $0x90] sm:$0xff] }
 0x416   : > { %v1970_v42 = vpop.f32.mrf.mxu0 }
 0x417   : > { %v1980_v45 = vadd.f32 %v1970_v42, %v1863_v41  ;;  %1987 = vrot.lane.b32.xlu0 %v1979_v35, %s3536_s21  ;;  %v3096_v41 = vld [vmem:[%s4876_s9 + $0x70] sm:$0xff]  ;;  %v3095_v42 = vld [vmem:[%s4876_s9 + $0x68] sm:$0xff] }
 0x418   : > { %v1974_v48 = vpop.f32.mrf.mxu0 }
 0x419   : > { %v1981_v53 = vadd.f32 %v1974_v48, %v1864_v46  ;;  %1989 = vrot.lane.b32.xlu1 %v1980_v45, %s3536_s21  ;;  %v3092_v46 = vld [vmem:[%s4876_s9 + $0x50] sm:$0xff] }
 0x41a   : > { %v1976_v55 = vpop.f32.mrf.mxu0 }
 0x41b   : > { %v1982_v56 = vadd.f32 %v1976_v55, %v1865_v54  ;;  %1991 = vrot.lane.b32.xlu0 %v1981_v53, %s3536_s21  ;;  %v3135_v54 = vld [vmem:[%s4876_s9 + $0x188] sm:$0xff] }
 0x41d   : > { %1993 = vrot.lane.b32.xlu1 %v1982_v56, %s3536_s21  ;;  %s3473_s21 = scalar_lea.vmem %s2859_s29, 16 }
 0x41e   : > { %p3474_p11 = scmp.ne.s32.totalorder %s2859_s29, %s3473_s21  ;;  %p3481_p1 = scmp.lt.s32.totalorder %s3479_s22, %s3473_s21 }
 0x420   : > { %p3475_p12 = pnand %p3474_p11, %p3657_p5  ;;  %p3482_p2 = por %p3481_p1, %p3480_p0 }
 0x422   : > { %p3476_p13 = pneg %p3475_p12 }
 0x424   : > { %p3483_p3 = pnand %p3482_p2, %p3476_p13 }
 0x489   : > { %v1988_v57 = vpop.permute.xlu0 %1987 }
 0x48b   : > { %v1990_v58 = vpop.permute.xlu1 %1989 }
 0x48c   : > { %v1995_v59 = vsel %vm1110_vm5, %v1988_v57, %v1990_v58  ;;  %v2002_v60 = vmax.f32 %v1980_v45, %v1990_v58  ;;  %v3093_v45 = vld [vmem:[%s4876_s9 + $0x58] sm:$0xff]  ;;  %v3134_v57 = vld [vmem:[%s4876_s9 + $0x180] sm:$0xff] }
 0x48d   : > { %v2001_v36 = vmax.f32 %v1979_v35, %v1995_v59  ;;  %v1992_v40 = vpop.permute.xlu0 %1991  ;;  %v3097_v35 = vld [vmem:[%s4876_s9 + $0x78] sm:$0xff] }
 0x48e   : > { %v2012_v2 = vrot.slane %v2002_v60, 1  ;;  %v2234_v58 = vld [vmem:[%s4876_s9 + $0x38] sm:$0xff] }
 0x48f   : > { %v1994_v61 = vpop.permute.xlu1 %1993  ;;  %v2009_v4 = vrot.slane %v2001_v36, 1  ;;  %v3133_v59 = vld [vmem:[%s4876_s9 + $0x178] sm:$0xff] }
 0x490   : > { %v1996_v63 = vsel %vm1110_vm5, %v1992_v40, %v1994_v61  ;;  %v2004_v0 = vmax.f32 %v1982_v56, %v1994_v61  ;;  %v2235_v56 = vld [vmem:[%s4876_s9 + $0x40] sm:$0xff]  ;;  %v2232_v40 = vld [vmem:[%s4876_s9 + $0x28] sm:$0xff] }
 0x491   : > { %v2003_v1 = vmax.f32 %v1981_v53, %v1996_v63  ;;  %v2236_v53 = vld [vmem:[%s4876_s9 + $0x48] sm:$0xff]  ;;  %v3130_v63 = vld [vmem:[%s4876_s9 + $0x160] sm:$0xff] }
 0x492   : > { %v2013_v3 = vrot.slane %v2004_v0, 1  ;;  %v3131_v61 = vld [vmem:[%s4876_s9 + $0x168] sm:$0xff] }
 0x493   : > { %v2010_v6 = vrot.slane %v2003_v1, 1 }
 0x494   : > { %v2014_v8 = vsel %vm517_vm0, %v2012_v2, %v2013_v3  ;;  %v2022_v9 = vmax.f32 %v2004_v0, %v2013_v3  ;;  %v2230_v0 = vld [vmem:[%s4876_s9 + $0x18] sm:$0xff]  ;;  %v2229_v2 = vld [vmem:[%s4876_s9 + $0x10] sm:$0xff] }
 0x495   : > { %v2011_v10 = vsel %vm517_vm0, %v2009_v4, %v2010_v6  ;;  %v2020_v11 = vmax.f32 %v2002_v60, %v2014_v8  ;;  %v2021_v13 = vmax.f32 %v2003_v1, %v2010_v6  ;;  %v2233_v60 = vld [vmem:[%s4876_s9 + $0x30] sm:$0xff]  ;;  %v3129_v1 = vld [vmem:[%s4876_s9 + $0x158] sm:$0xff]  ;;  %v2228_v4 = vld [vmem:[%s4876_s9 + $0x8] sm:$0xff]  ;;  %vm2832_vm0 = vcmask 73728  }
 0x496   : > { %v2019_v12 = vmax.f32 %v2001_v36, %v2011_v10  ;;  %v2038_v14 = vadd.f32 %v2032_v5, %v2022_v9  ;;  %v3132_v36 = vld [vmem:[%s4876_s9 + $0x170] sm:$0xff]  ;;  %v2227_v6 = vld [vmem:[%s4876_s9] sm:$0xff]  ;;  %v3124_v8 = vld [vmem:[%s4876_s9 + $0x138] sm:$0xff] }
 0x497   : > { %v2036_v15 = vadd.f32 %v2032_v5, %v2020_v11  ;;  %v2037_v19 = vadd.f32 %v2028_v7, %v2021_v13  ;;  %v3128_v3 = vld [vmem:[%s4876_s9 + $0x150] sm:$0xff]  ;;  %v3127_v5 = vld [vmem:[%s4876_s9 + $0x148] sm:$0xff]  ;;  %v3120_v13 = vld [vmem:[%s4876_s9 + $0x118] sm:$0xff] }
 0x498   : > { %v2035_v16 = vadd.f32 %v2028_v7, %v2019_v12  ;;  %v2042_v49 = vmax.f32 %v2038_v14, 0.0  ;;  %v3126_v7 = vld [vmem:[%s4876_s9 + $0x140] sm:$0xff]  ;;  %v3123_v10 = vld [vmem:[%s4876_s9 + $0x130] sm:$0xff]  ;;  %v3122_v11 = vld [vmem:[%s4876_s9 + $0x128] sm:$0xff] }
 0x499   : > { %v2040_v17 = vmax.f32 %v2036_v15, 0.0  ;;  %v2041_v44 = vmax.f32 %v2037_v19, 0.0  ;;  %v3121_v12 = vld [vmem:[%s4876_s9 + $0x120] sm:$0xff]  ;;  %v3119_v14 = vld [vmem:[%s4876_s9 + $0x110] sm:$0xff]  ;;  %v3118_v15 = vld [vmem:[%s4876_s9 + $0x108] sm:$0xff] }
 0x49a   : > { %v2039_v18 = vmax.f32 %v2035_v16, 0.0  ;;  %v3117_v16 = vld [vmem:[%s4876_s9 + $0x100] sm:$0xff] }
 0x49b   : > { %3088 = vmatprep.mubr.msk.f32.mxu1 %vm2064_vm10, %v2040_v17  ;;  %v3116_v17 = vld [vmem:[%s4876_s9 + $0xf8] sm:$0xff] }
 0x49c   : > { %2139 = vmatmul.mubr.f32.vlgmr.msra.gmra.mxu1 %v2039_v18  ;;  %v3115_v18 = vld [vmem:[%s4876_s9 + $0xf0] sm:$0xff] }
 0x49d   : > { %3089 = vmatprep.mubr.msk.f32.mxu1 %vm2064_vm10, %v2042_v49  ;;  %3301 = vmatpush3.msra.mxu1 %v3113_v51  ;;  %v2667_v49 = vld [vmem:[%s4878_s11 + $0x70] sm:$0xff]  ;;  %v2665_v51 = vld [vmem:[%s4878_s11 + $0x60] sm:$0xff] }
 0x49e   : > { %3302 = vmatprep.subr.mxu1 %v3535_v22 }
 0x49f   : > { %3303 = vmatpush3.msra.mxu1 %v3112_v20  ;;  %v2664_v20 = vld [vmem:[%s4878_s11 + $0x58] sm:$0xff] }
 0x4a0   : > { %2144 = vmatmul.mubr.f32.gmra.mxu1 %v2041_v44  ;;  %3304 = vmatprep.subr.mxu1 %v3535_v22  ;;  %v2666_v44 = vld [vmem:[%s4878_s11 + $0x68] sm:$0xff] }
 0x4a1   : > { %3320 = vmatprep.mubr.msk.f32.mxu1 %vm3537_vm11, %v3535_v22  ;;  %3305 = vmatpush3.msra.mxu1 %v3111_v21  ;;  %v2663_v21 = vld [vmem:[%s4878_s11 + $0x50] sm:$0xff] }
 0x4a2   : > { %3306 = vmatprep.subr.mxu1 %v3535_v22 }
 0x4a3   : > { %3307 = vmatpush3.msra.mxu1 %v3110_v23  ;;  %v2662_v23 = vld [vmem:[%s4878_s11 + $0x48] sm:$0xff] }
 0x4a4   : > { %3308 = vmatprep.subr.mxu1 %v3535_v22 }
 0x4a5   : > { %3309 = vmatpush3.msra.mxu1 %v3109_v24  ;;  %v2661_v24 = vld [vmem:[%s4878_s11 + $0x40] sm:$0xff] }
 0x4a6   : > { %3310 = vmatprep.subr.mxu1 %v3535_v22 }
 0x4a7   : > { %3311 = vmatpush3.msra.mxu1 %v3108_v25  ;;  %v2660_v25 = vld [vmem:[%s4878_s11 + $0x38] sm:$0xff] }
 0x4a8   : > { %3312 = vmatprep.subr.mxu1 %v3535_v22 }
 0x4a9   : > { %3313 = vmatpush3.msra.mxu1 %v3107_v26  ;;  %v2659_v26 = vld [vmem:[%s4878_s11 + $0x30] sm:$0xff] }
 0x4aa   : > { %3314 = vmatprep.subr.mxu1 %v3535_v22 }
 0x4ab   : > { %3315 = vmatpush3.msra.mxu1 %v3106_v27  ;;  %v2658_v27 = vld [vmem:[%s4878_s11 + $0x28] sm:$0xff] }
 0x4ac   : > { %3316 = vmatprep.subr.mxu1 %v3535_v22 }
 0x4ad   : > { %3317 = vmatpush3.msra.mxu1 %v3105_v28  ;;  %v2657_v28 = vld [vmem:[%s4878_s11 + $0x20] sm:$0xff] }
 0x4ae   : > { %3318 = vmatprep.subr.mxu1 %v3535_v22 }
 0x4af   : > { %3319 = vmatpush3.msra.mxu1 %v3104_v47 }
 0x4b0   : > { %3346 = vmatprep.subr.mxu1 %v3535_v22 }
 0x55c   : > { %v2140_v29 = vpop.f32.mrf.mxu1 }
 0x55e   : > { %v2142_v30 = vpop.f32.mrf.mxu1 }
 0x55f   : > { %v2655_v30 = vld [vmem:[%s4878_s11 + $0x10] sm:$0xff] }
 0x560   : > { %v2145_v31 = vpop.f32.mrf.mxu1 }
 0x561   : > { %3248 = vmatpush3.msk.msra.mxu0 %vm2153_vm12, %v2145_v31  ;;  %v2654_v31 = vld [vmem:[%s4878_s11 + $0x8] sm:$0xff] }
 0x562   : > { %v2147_v33 = vpop.f32.mrf.mxu1  ;;  %3249 = vmatprep.subr.mxu0 %v3535_v22 }
 0x563   : > { %3250 = vmatpush3.msra.mxu0 %v2140_v29  ;;  %v2656_v29 = vld [vmem:[%s4878_s11 + $0x18] sm:$0xff]  ;;  %v2754_v33 = vld [vmem:[%s4880_s13 + $0x50] sm:$0xf] }
 0x564   : > { %3252 = vmatmul.mubr.msk.f32.vlgmr.msra.gmra.mxu0 %vm2149_vm13, %v2043_v32  ;;  %3254 = vmatprep.subr.mxu0 %v3535_v22  ;;  %v2653_v32 = vld [vmem:[%s4878_s11] sm:$0xff] }
 0x565   : > { %3255 = vmatpush3.msra.mxu0 %v3101_v34  ;;  %3274 = vmatprep.mubr.msk.f32.mxu0 %vm3537_vm11, %v3535_v22  ;;  %v2753_v34 = vld [vmem:[%s4880_s13 + $0x48] sm:$0xff] }
 0x566   : > { %3256 = vmatprep.subr.mxu0 %v3535_v22 }
 0x567   : > { %3257 = vmatpush3.msra.mxu0 %v3100_v37  ;;  %v2752_v37 = vld [vmem:[%s4880_s13 + $0x40] sm:$0xff] }
 0x568   : > { %3258 = vmatprep.subr.mxu0 %v3535_v22 }
 0x569   : > { %3259 = vmatpush3.msra.mxu0 %v3099_v38  ;;  %v2751_v38 = vld [vmem:[%s4880_s13 + $0x38] sm:$0xff] }
 0x56a   : > { %3260 = vmatprep.subr.mxu0 %v3535_v22 }
 0x56b   : > { %3261 = vmatpush3.msra.mxu0 %v3098_v39  ;;  %v2750_v39 = vld [vmem:[%s4880_s13 + $0x30] sm:$0xff] }
 0x56c   : > { %3262 = vmatprep.subr.mxu0 %v3535_v22 }
 0x56d   : > { %3263 = vmatpush3.msra.mxu0 %v3097_v35  ;;  %v2749_v35 = vld [vmem:[%s4880_s13 + $0x28] sm:$0xff] }
 0x56e   : > { %3264 = vmatprep.subr.mxu0 %v3535_v22 }
 0x56f   : > { %3265 = vmatpush3.msra.mxu0 %v3096_v41  ;;  %v2748_v41 = vld [vmem:[%s4880_s13 + $0x20] sm:$0xff] }
 0x570   : > { %3266 = vmatprep.subr.mxu0 %v3535_v22 }
 0x571   : > { %3267 = vmatpush3.msra.mxu0 %v3095_v42  ;;  %v2747_v42 = vld [vmem:[%s4880_s13 + $0x18] sm:$0xff] }
 0x572   : > { %3268 = vmatprep.subr.mxu0 %v3535_v22 }
 0x573   : > { %3269 = vmatpush3.msra.mxu0 %v3094_v43 }
 0x574   : > { %3270 = vmatprep.subr.mxu0 %v3535_v22 }
 0x575   : > { %3271 = vmatpush3.msra.mxu0 %v3093_v45 }
 0x576   : > { %3272 = vmatprep.subr.mxu0 %v3535_v22 }
 0x577   : > { %3273 = vmatpush3.msra.mxu0 %v3092_v46 }
 0x578   : > { %3277 = vmatprep.subr.mxu0 %v3535_v22 }
 0x624   : > { %v4575_v48 = vpop.f32.mrf.mxu0 }
 0x625   : > { %v2249_v50 = vrot.slane %v4575_v48, 1  ;;  %v2406_v52 = vrot.slane %v4575_v48, 2  ;;  %v2576_v9 = vrot.slane %v4575_v48, 4  ;;  %v2491_v19 = vrot.slane %v4575_v48, 3 }
 0x626   : > { %v3253_v55 = vpop.f32.mrf.mxu0 }
 0x627   : > { %3275 = vmatmul.mubr.msk.f32.vlgmr.msra.gmra.mxu0 %vm2250_vm14, %v2249_v50  ;;  %3321 = vmatmul.mubr.msk.f32.vlgmr.msra.gmra.mxu1 %vm2250_vm14, %v2406_v52 }
 0x628   : > { %3278 = vmatpush3.msra.mxu0 %v2236_v53  ;;  %3347 = vmatpush3.msra.mxu1 %v3135_v54 }
 0x629   : > { %3279 = vmatprep.subr.mxu0 %v3535_v22  ;;  %3348 = vmatprep.subr.mxu1 %v3535_v22 }
 0x62a   : > { %3280 = vmatpush3.msra.mxu0 %v2235_v56  ;;  %3349 = vmatpush3.msra.mxu1 %v3134_v57 }
 0x62b   : > { %3281 = vmatprep.subr.mxu0 %v3535_v22  ;;  %3350 = vmatprep.subr.mxu1 %v3535_v22 }
 0x62c   : > { %3282 = vmatpush3.msra.mxu0 %v2234_v58  ;;  %3351 = vmatpush3.msra.mxu1 %v3133_v59  ;;  %v2650_v58 = vld [vmem:[%s4877_s10] sm:$0x1] }
 0x62d   : > { %3283 = vmatprep.subr.mxu0 %v3535_v22  ;;  %3352 = vmatprep.subr.mxu1 %v3535_v22 }
 0x62e   : > { %3284 = vmatpush3.msra.mxu0 %v2233_v60  ;;  %3353 = vmatpush3.msra.mxu1 %v3132_v36 }
 0x62f   : > { %3285 = vmatprep.subr.mxu0 %v3535_v22  ;;  %3354 = vmatprep.subr.mxu1 %v3535_v22 }
 0x630   : > { %3286 = vmatpush3.msra.mxu0 %v2232_v40  ;;  %3355 = vmatpush3.msra.mxu1 %v3131_v61  ;;  %v2746_v61 = vld [vmem:[%s4880_s13 + $0x10] sm:$0xff] }
 0x631   : > { %3287 = vmatprep.subr.mxu0 %v3535_v22  ;;  %3356 = vmatprep.subr.mxu1 %v3535_v22 }
 0x632   : > { %3288 = vmatpush3.msra.mxu0 %v2231_v62  ;;  %3357 = vmatpush3.msra.mxu1 %v3130_v63  ;;  %v2745_v62 = vld [vmem:[%s4880_s13 + $0x8] sm:$0xff]  ;;  %v2744_v63 = vld [vmem:[%s4880_s13] sm:$0xff] }
 0x633   : > { %3289 = vmatprep.subr.mxu0 %v3535_v22  ;;  %3358 = vmatprep.subr.mxu1 %v3535_v22 }
 0x634   : > { %3290 = vmatpush3.msra.mxu0 %v2230_v0  ;;  %3359 = vmatpush3.msra.mxu1 %v3129_v1  ;;  %v2668_v0 = vld [vmem:[%s4879_s12] sm:$0x1] }
 0x635   : > { %3291 = vmatprep.subr.mxu0 %v3535_v22  ;;  %3360 = vmatprep.subr.mxu1 %v3535_v22 }
 0x636   : > { %3292 = vmatpush3.msra.mxu0 %v2229_v2  ;;  %3361 = vmatpush3.msra.mxu1 %v3128_v3 }
 0x637   : > { %3293 = vmatprep.subr.mxu0 %v3535_v22  ;;  %3362 = vmatprep.subr.mxu1 %v3535_v22 }
 0x638   : > { %3294 = vmatpush3.msra.mxu0 %v2228_v4  ;;  %3363 = vmatpush3.msra.mxu1 %v3127_v5  ;;  %v2755_v5 = vld [vmem:[%s4881_s14] sm:$0x1] }
 0x639   : > { %3295 = vmatprep.subr.mxu0 %v3535_v22  ;;  %3364 = vmatprep.subr.mxu1 %v3535_v22 }
 0x63a   : > { %3296 = vmatpush3.msra.mxu0 %v2227_v6  ;;  %3297 = vmatprep.mubr.msk.f32.mxu0 %vm3537_vm11, %v3535_v22 }
 0x63b   : > { %3365 = vmatpush3.msra.mxu1 %v3126_v7  ;;  %3366 = vmatprep.mubr.msk.f32.mxu1 %vm3537_vm11, %v3535_v22 }
 0x63c   : > { %3298 = vmatmul.mubr.msk.f32.vlgmr.msra.gmra.mxu0 %vm2250_vm14, %v4575_v48  ;;  %3323 = vmatprep.subr.mxu0 %v3535_v22 }
 0x63d   : > { %3367 = vmatmul.mubr.msk.f32.vlgmr.msra.gmra.mxu1 %vm2250_vm14, %v2576_v9  ;;  %3324 = vmatpush3.msra.mxu0 %v3124_v8 }
 0x63e   : > { %3325 = vmatprep.subr.mxu0 %v3535_v22  ;;  %3343 = vmatprep.mubr.msk.f32.mxu0 %vm3537_vm11, %v3535_v22 }
 0x63f   : > { %3326 = vmatpush3.msra.mxu0 %v3123_v10  ;;  %3402 = vmatprep.subr.mxu1 %v3535_v22 }
 0x640   : > { %3327 = vmatprep.subr.mxu0 %v3535_v22  ;;  %3424 = vmatprep.mubr.msk.f32.mxu1 %vm3537_vm11, %v3535_v22 }
 0x641   : > { %3328 = vmatpush3.msra.mxu0 %v3122_v11  ;;  %3403 = vmatpush3.msk.msra.mxu1 %vm973_vm4, %v2754_v33 }
 0x642   : > { %3329 = vmatprep.subr.mxu0 %v3535_v22  ;;  %3404 = vmatprep.subr.mxu1 %v3535_v22 }
 0x643   : > { %3330 = vmatpush3.msra.mxu0 %v3121_v12  ;;  %3405 = vmatpush3.msra.mxu1 %v2753_v34 }
 0x644   : > { %3331 = vmatprep.subr.mxu0 %v3535_v22  ;;  %3406 = vmatprep.subr.mxu1 %v3535_v22 }
 0x645   : > { %3332 = vmatpush3.msra.mxu0 %v3120_v13  ;;  %3407 = vmatpush3.msra.mxu1 %v2752_v37 }
 0x646   : > { %3333 = vmatprep.subr.mxu0 %v3535_v22  ;;  %3408 = vmatprep.subr.mxu1 %v3535_v22 }
 0x647   : > { %3334 = vmatpush3.msra.mxu0 %v3119_v14  ;;  %3409 = vmatpush3.msra.mxu1 %v2751_v38 }
 0x648   : > { %3335 = vmatprep.subr.mxu0 %v3535_v22  ;;  %3410 = vmatprep.subr.mxu1 %v3535_v22 }
 0x649   : > { %3336 = vmatpush3.msra.mxu0 %v3118_v15  ;;  %3411 = vmatpush3.msra.mxu1 %v2750_v39 }
 0x64a   : > { %3337 = vmatprep.subr.mxu0 %v3535_v22  ;;  %3412 = vmatprep.subr.mxu1 %v3535_v22 }
 0x64b   : > { %3338 = vmatpush3.msra.mxu0 %v3117_v16  ;;  %3413 = vmatpush3.msra.mxu1 %v2749_v35 }
 0x64c   : > { %3339 = vmatprep.subr.mxu0 %v3535_v22  ;;  %3414 = vmatprep.subr.mxu1 %v3535_v22 }
 0x64d   : > { %3340 = vmatpush3.msra.mxu0 %v3116_v17  ;;  %3415 = vmatpush3.msra.mxu1 %v2748_v41 }
 0x64e   : > { %3341 = vmatprep.subr.mxu0 %v3535_v22  ;;  %3416 = vmatprep.subr.mxu1 %v3535_v22 }
 0x64f   : > { %3342 = vmatpush3.msra.mxu0 %v3115_v18  ;;  %3417 = vmatpush3.msra.mxu1 %v2747_v42 }
 0x650   : > { %3344 = vmatmul.mubr.msk.f32.vlgmr.msra.gmra.mxu0 %vm2250_vm14, %v2491_v19  ;;  %3369 = vmatprep.subr.mxu0 %v3535_v22 }
 0x651   : > { %3399 = vmatprep.mubr.msk.f32.mxu0 %vm3537_vm11, %v3535_v22  ;;  %3370 = vmatpush3.msra.mxu0 %v2667_v49 }
 0x652   : > { %3371 = vmatprep.subr.mxu0 %v3535_v22  ;;  %3418 = vmatprep.subr.mxu1 %v3535_v22 }
 0x653   : > { %3372 = vmatpush3.msra.mxu0 %v2666_v44  ;;  %3419 = vmatpush3.msra.mxu1 %v2746_v61 }
 0x654   : > { %3373 = vmatprep.subr.mxu0 %v3535_v22  ;;  %3420 = vmatprep.subr.mxu1 %v3535_v22 }
 0x655   : > { %3374 = vmatpush3.msra.mxu0 %v2665_v51  ;;  %3421 = vmatpush3.msra.mxu1 %v2745_v62 }
 0x656   : > { %3375 = vmatprep.subr.mxu0 %v3535_v22  ;;  %3422 = vmatprep.subr.mxu1 %v3535_v22 }
 0x657   : > { %3376 = vmatpush3.msra.mxu0 %v2664_v20  ;;  %3423 = vmatpush3.msra.mxu1 %v2744_v63 }
 0x658   : > { %3377 = vmatprep.subr.mxu0 %v3535_v22 }
 0x659   : > { %3378 = vmatpush3.msra.mxu0 %v2663_v21 }
 0x65a   : > { %3379 = vmatprep.subr.mxu0 %v3535_v22 }
 0x65b   : > { %3380 = vmatpush3.msra.mxu0 %v2662_v23 }
 0x65c   : > { %3381 = vmatprep.subr.mxu0 %v3535_v22 }
 0x65d   : > { %3382 = vmatpush3.msra.mxu0 %v2661_v24 }
 0x65e   : > { %3383 = vmatprep.subr.mxu0 %v3535_v22 }
 0x65f   : > { %3384 = vmatpush3.msra.mxu0 %v2660_v25 }
 0x660   : > { %3385 = vmatprep.subr.mxu0 %v3535_v22 }
 0x661   : > { %3386 = vmatpush3.msra.mxu0 %v2659_v26 }
 0x662   : > { %3387 = vmatprep.subr.mxu0 %v3535_v22 }
 0x663   : > { %3388 = vmatpush3.msra.mxu0 %v2658_v27 }
 0x664   : > { %3389 = vmatprep.subr.mxu0 %v3535_v22 }
 0x665   : > { %3390 = vmatpush3.msra.mxu0 %v2657_v28 }
 0x666   : > { %3391 = vmatprep.subr.mxu0 %v3535_v22 }
 0x667   : > { %3392 = vmatpush3.msra.mxu0 %v2656_v29 }
 0x668   : > { %3393 = vmatprep.subr.mxu0 %v3535_v22 }
 0x669   : > { %3394 = vmatpush3.msra.mxu0 %v2655_v30 }
 0x66a   : > { %3395 = vmatprep.subr.mxu0 %v3535_v22 }
 0x66b   : > { %3396 = vmatpush3.msra.mxu0 %v2654_v31 }
 0x66c   : > { %3397 = vmatprep.subr.mxu0 %v3535_v22 }
 0x66d   : > { %3398 = vmatpush3.msra.mxu0 %v2653_v32 }
 0x6e7   : > { %v2319_v43 = vpop.f32.mrf.mxu0  ;;  %v2475_v45 = vpop.f32.mrf.mxu1 }
 0x6e9   : > { %v3276_v46 = vpop.f32.mrf.mxu0  ;;  %v3322_v47 = vpop.f32.mrf.mxu1 }
 0x6fc   : > { %v2391_v48 = vpop.f32.mrf.mxu0 }
 0x6fd   : > { %v2645_v50 = vpop.f32.mrf.mxu1  ;;  %v2392_v54 = vadd.f32 %v2391_v48, %v2319_v43 }
 0x6fe   : > { %v3299_v52 = vpop.f32.mrf.mxu0 }
 0x6ff   : > { %v3368_v53 = vpop.f32.mrf.mxu1  ;;  %v2479_v55 = vadd.f32 %v2475_v45, %v2392_v54 }
 0x710   : > { %v2560_v56 = vpop.f32.mrf.mxu0 }
 0x711   : > { %v2564_v57 = vadd.f32 %v2560_v56, %v2479_v55 }
 0x712   : > { %v3345_v59 = vpop.f32.mrf.mxu0 }
 0x713   : > { %v2649_v60 = vadd.f32 %v2645_v50, %v2564_v57 }
 0x715   : > { %v2651_v36 = vadd.f32 %v2650_v58, %v2649_v60 }
 0x717   : > { %v2652_v40 = vmax.f32 %v2651_v36, 0.0 }
 0x719   : > { %3400 = vmatmul.mubr.msk.f32.vlgmr.msra.gmra.mxu0 %vm2669_vm15, %v2652_v40 }
 0x7d9   : > { %v2739_v1 = vpop.f32.mrf.mxu0 }
 0x7da   : > { %v2740_v2 = vadd.f32 %v2739_v1, %v2668_v0 }
 0x7db   : > { %v3401_v3 = vpop.f32.mrf.mxu0 }
 0x7dc   : > { %v2743_v4 = vmax.f32 %v2740_v2, 0.0 }
 0x7de   : > { %3425 = vmatmul.mubr.msk.f32.vlgmr.msra.gmra.mxu1 %vm1457_vm9, %v2743_v4 }
 0x89e   : > { %v2828_v6 = vpop.f32.mrf.mxu1 }
 0x89f   : > { %v2829_v22 = vadd.f32 %v2828_v6, %v2755_v5 }
 0x8a0   : > { %v3426_v7 = vpop.f32.mrf.mxu1 }
 0x8a1   : > { %v2833_v8 = vsel %vm2832_vm0, %v2829_v22, -inf }
 0x8a2   : > { %2834 = vmax.xlane.f32.xlu0 %v2833_v8 }
 0x92b   : > { %v2835_v9 = vpop.xlane.xlu0 %2834 }
 0x92c   : > { %v2836_v10 = vsub.f32 %v2829_v22, %v2835_v9 }
 0x92e   : > { %v2837_v11 = vmul.f32 1.442695, %v2836_v10 }
 0x930   : > { %3469 = vpow2.f32 %v2837_v11 }
 0x93d   : > { %v3470_v12 = vpop.eup %3469 }
 0x93e   : > { %v2839_v13 = vsel %vm2832_vm0, %v3470_v12, 0.0 }
 0x93f   : > { %2840 = vadd.xlane.f32.xlu1 %v2839_v13 }
 0x9c8   : > { %v2841_v14 = vpop.xlane.xlu1 %2840 }
 0x9c9   : > { %3471 = vrcp.f32 %v2841_v14 }
 0x9d6   : > { %v3472_v15 = vpop.eup %3471 }
 0x9d7   : > { %v2843_v16 = vmul.f32 %v3472_v15, %v3470_v12 }
 0x9d9   : > { %2844 = vst.msk [vmem:[%s486_s30] sm:$0x1] %vm2832_vm0, %v2843_v16 }
 0x9da   : > { %3486 = shalt.err (!%p3483_p3)
}
 0x9db   : > { %s3487_s26 = scalar_lea.hbm %s2856_s17, 16  ;;  %s3491_s30 = scalar_lea.hbm %s4882_s15, 32 }
 0x9dc   : > { %p3488_p4 = scmp.ne.s32.totalorder %s2856_s17, %s3487_s26  ;;  %p3492_p9 = scmp.lt.s32.totalorder %s2856_s17, %s4882_s15 }
 0x9dd   : > { %p3493_p10 = scmp.lt.s32.totalorder %s3491_s30, %s3487_s26 }
 0x9de   : > { %p3489_p7 = pnand %p3488_p4, %p3657_p5 }
 0x9df   : > { %p3494_p11 = por %p3493_p10, %p3492_p9 }
 0x9e0   : > { %p3490_p8 = pneg %p3489_p7 }
 0x9e2   : > { %p3495_p12 = pnand %p3494_p11, %p3490_p8 }
 0x9e4   : > { %3498 = shalt.err (!%p3495_p12)
}
 0x9e5   : > { %3427 = dma.vmem_to_hbm [thread:$0]  (%p3657_p5), %s2859_s29, 16, %s2856_s17, %s2846_s23  }
 0x9e6 PF: > { %s4897_s21 = sld [smem:[#allocation7_spill]] }
 0x9e7   : > { %s4898_s25 = sld [smem:[#allocation5_spill]] }
 0x9ec   : > { %p3433_p13 = scmp.ge.s32.totalorder %s4897_s21, 2 }
 0x9ed   : > { %s2870_s22 = sand.u32 1, %s4898_s25  }
 0x9ee   : > { %p3430_p0 = pnand %p3433_p13, %p3661_p6  ;;  %s2871_s20 = scalar_lea.sflag [#allocation3], %s2870_s22 }
 0x9f0   : > { %p3431_p1 = pneg %p3430_p0 }
 0x9f2   : > { %3516 = dma.done.wait (%p3431_p1), %s2871_s20, 16  }
 0x9f3   : > { %3518 = vsyncadd (%p3431_p1), %s2871_s20, 4294967280  ;;  %s4900_s21 = sld [smem:[#allocation8_spill]]  ;;  %s4903_s18 = smov %s3525_s19 }
 0x9f4   : > { %s4901_s26 = sld [smem:[#allocation6_spill]] }
 0x9f5   : > { %s4902_s20 = sld [smem:[#allocation9_spill]] }
 0x9f9   : > { %p25_p2 = scmp.ge.s32.totalorder %s4900_s21, 4  }
 0x9fa   : > { %s4904_s19 = smov %s4901_s26 }
 0x9fb   :  { %27 = sbr.rel (!%p25_p2) target bundleno = 3 (0x3), region = 127 }
 0xa00   :  { %2875 = vsyncpa [#allocation3], 1 }
 0xa01   :  { %2877 = vsyncpa [#allocation3 + $0x1], 1 }

</bundles_post_ra>
